<compile_context>
chip_gen: v6e
topology: v6e:2x2x1
jax: 0.10.0
libtpu: 0.0.40
codegen_flags: <defaults>
</compile_context>

<pallas_src>
import jax
import jax.numpy as jnp
import numpy as np
from jax.experimental import pallas as pl
from jax.experimental.pallas import tpu as pltpu

# ---- config (small, deterministic) ------------------------------------------
NUM_TASKS = 3
BATCH = 8
INPUT_DIM = 32
HIDDEN_DIM = 32

_TB = NUM_TASKS * BATCH
_TH = NUM_TASKS * HIDDEN_DIM

# numpy constants baked into the jit (no wrapper HLO to build them)
_ROW_TASK = np.repeat(np.arange(NUM_TASKS), BATCH)                       # (TB,)
_COL_TASK = np.repeat(np.arange(NUM_TASKS), HIDDEN_DIM)                  # (TH,)
_DIAG_NP = (_ROW_TASK[:, None] == _COL_TASK[None, :]).astype(np.float32)  # (TB, TH)
_EYE_T = np.eye(NUM_TASKS, dtype=np.float32)


def _bce(p, y):
    # F.binary_cross_entropy(..., reduction='none') with torch's log clamp @ -100
    log_p = jnp.maximum(jnp.log(p), -100.0)
    log_1mp = jnp.maximum(jnp.log(1.0 - p), -100.0)
    return -(y * log_p + (1.0 - y) * log_1mp)


# ---- the Pallas kernel -------------------------------------------------------
def amtl_kernel(act_ref, w_ref, out_ref):
    f32 = jnp.float32
    T, B, D, H = NUM_TASKS, BATCH, INPUT_DIM, HIDDEN_DIM
    TB, TH = T * B, T * H

    # -- activation slab fields: (TB, TH) row-block slices, 8-sublane aligned --
    xys   = act_ref[0 * TB:1 * TB, :]   # [y | b_wo | b_wt | x | 0-pad]
    eps   = act_ref[1 * TB:2 * TB, :]   # diag blocks: pass-1 eps; off-diag: eps_b
    w_wo  = act_ref[2 * TB:3 * TB, :]   # diag-masked pass-1 head weights
    w_wt  = act_ref[3 * TB:4 * TB, :]   # diag-masked pass-2 head weights
    wsrc  = act_ref[4 * TB:5 * TB, :]   # F_{i,j} source-loss weight, block (i,j)
    wtgt  = act_ref[5 * TB:6 * TB, :]   # F_{i,j} target-loss weight
    bfm   = act_ref[6 * TB:7 * TB, :]   # F_{i,j} bias
    diagm = act_ref[7 * TB:8 * TB, :]   # 1.0 on diagonal (i==j) blocks, else 0.0

    y    = xys[:, 0:1]
    b_wo = xys[:, 1:2]
    b_wt = xys[:, 2:3]

    # -- weight slab column offsets (all 128-lane aligned) ----------------------
    C_MU, C_SG, C_GE, C_GD, C_BASE = 0, 128, 256, 384, 512

    def mm(lhs, col):
        w = w_ref[0:TH, col:col + TH]          # (TH, TH) weight block
        b = w_ref[TH:TH + 1, col:col + TH]     # (1, TH)  bias row
        return jnp.dot(lhs, w, preferred_element_type=f32) + b

    # 1. base layer for every (task-i row block, owner-j column block).
    #    Non-x lanes of xys hit zero weight rows -> contribute exactly 0.
    h_all = jnp.maximum(mm(xys, C_BASE), 0.0)                           # (TB, TH)

    # 2. mu / raw sigma via block-diagonal weights (one matmul each).
    mu_all = mm(h_all, C_MU)                                            # (TB, TH)
    sg_raw = mm(h_all, C_SG)                                            # (TB, TH)

    # 3. hidden slab: softplus(sigma) on diagonal (pass-1) blocks, raw sigma on
    #    off-diagonal (borrow) blocks — full-width select, no slicing.
    sg_eff = jnp.where(diagm > 0.5, jax.nn.softplus(sg_raw), sg_raw)
    hb_all = mu_all + sg_eff * eps                                      # (TB, TH)

    # 4. pass-1 output head: masked full-width multiply + lane reduce (no MXU).
    logits_wo = jnp.sum(hb_all * w_wo, axis=-1, keepdims=True) + b_wo   # (TB, 1)
    p_wo = jax.nn.sigmoid(logits_wo)
    loss_wo = _bce(p_wo, y)                                             # (TB, 1)

    # 5. per-task mean losses broadcast to column blocks / row blocks
    #    (one sublane reduce + one lane reduce; no scalar extraction).
    lm_col = jnp.sum(loss_wo * diagm, axis=0, keepdims=True) * (1.0 / B)   # (1, TH)
    lm_row = jnp.sum(diagm * lm_col, axis=-1, keepdims=True) * (1.0 / H)   # (TB, 1)

    # 6. transfer gates for all (i, j), zeroed on the diagonal.
    gates = jax.nn.sigmoid(lm_row * wsrc + lm_col * wtgt + bfm) * (1.0 - diagm)

    # 7. encoder on borrow hiddens, gated sum over sources, single G_decoder
    #    matmul: dec_big[rows i, col block k] = (sum_j gate*enc_j) @ W_Gd[k],
    #    the k==i (diagonal) block is the per-target decoder output.
    enc_all = mm(hb_all, C_GE)                                          # (TB, TH)
    dec_big = mm(gates * enc_all, C_GD)                                 # (TB, TH)
    combine = hb_all + dec_big                                          # diag valid

    # 8. pass-2 output head (diagonal selection folded into the masked reduce).
    logits_wt = jnp.sum(combine * w_wt, axis=-1, keepdims=True) + b_wt
    p_wt = jax.nn.sigmoid(logits_wt)
    loss_wt = _bce(p_wt, y)

    # 9. single lane-dense store: [loss_wo | loss_wt | p_wo | p_wt | 0-pad].
    lane = jax.lax.broadcasted_iota(jnp.int32, (TB, 128), 1)
    packed = (jnp.where(lane == 0, loss_wo, 0.0)
              + jnp.where(lane == 1, loss_wt, 0.0)
              + jnp.where(lane == 2, p_wo, 0.0)
              + jnp.where(lane == 3, p_wt, 0.0))
    out_ref[...] = packed


# ---- wrapper: pack everything into two slabs, call the kernel -----------------
@jax.jit
def amtl_forward(params, x, y, eps, eps_b):
    f32 = jnp.float32
    T, B, D, H = NUM_TASKS, BATCH, INPUT_DIM, HIDDEN_DIM
    TB, TH = T * B, T * H
    diagm = jnp.asarray(_DIAG_NP)

    # ---- activation slab: 8 (TB, TH) fields stacked along sublanes -----------
    x_all = x.reshape(TB, D)
    y_all = y.reshape(TB, 1)
    b_wo_rows = params["b_out_wo"][_ROW_TASK][:, None]                  # (TB, 1)
    b_wt_rows = params["b_out_wt"][_ROW_TASK][:, None]
    xys = jnp.concatenate(
        [y_all, b_wo_rows, b_wt_rows, x_all,
         jnp.zeros((TB, TH - D - 3), f32)], axis=1)                     # (TB, TH)

    # epsilon: pass-1 eps[i] on diagonal blocks, pass-2 eps_b[i, j] off-diagonal
    e_mix = (_EYE_T[:, :, None] * eps.reshape(T, 1, H)
             + (1.0 - _EYE_T)[:, :, None] * eps_b.reshape(T, T, H))     # (T, T, H)
    eps_eff = jnp.repeat(e_mix.reshape(T, TH), B, axis=0)               # (TB, TH)

    # diag-masked output-head weights
    w_wo_p = diagm * params["w_out_wo"][:, :, 0].reshape(1, TH)
    w_wt_p = diagm * params["w_out_wt"][:, :, 0].reshape(1, TH)

    # transfer-gate parameter matrices, block (i, j) constant
    ones_bh = jnp.ones((B, H), f32)
    wf = params["w_F"]
    wsrc = jnp.kron(wf[0::2].reshape(T, T), ones_bh)
    wtgt = jnp.kron(wf[1::2].reshape(T, T), ones_bh)
    bfm = jnp.kron(params["b_F"].reshape(T, T), ones_bh)

    act_slab = jnp.concatenate(
        [xys, eps_eff, w_wo_p, w_wt_p, wsrc, wtgt, bfm, diagm], axis=0)  # (192, 96)

    # ---- weight + bias slab (104, 640), 128-lane aligned column blocks -------
    eye_bd = _EYE_T[:, None, :, None]                                    # (T,1,T,1)

    def block_diag(w):                                                   # (T,H,H)->(TH,TH)
        return (eye_bd * w[:, :, None, :]).reshape(TH, TH)

    wmu_bd = block_diag(params["w_mu"])
    wsg_bd = block_diag(params["w_sigma"])
    wge_bd = block_diag(params["w_Ge"])
    # G_decoder "big": row block j, col block k == W_Gd[k]  (sums sources,
    # diagonal column block k==i is the per-target result)
    wgd_big = jnp.tile(jnp.transpose(params["w_Gd"], (1, 0, 2)).reshape(H, TH), (T, 1))
    # base weights padded to TH rows, aligned with xys column layout (x at cols 3..34)
    wb_pad = jnp.concatenate(
        [jnp.zeros((3, TH), f32),
         jnp.transpose(params["w_base"], (1, 0, 2)).reshape(D, TH),
         jnp.zeros((TH - D - 3, TH), f32)], axis=0)                      # (TH, TH)

    zc = jnp.zeros((TH, 32), f32)
    w_rows = jnp.concatenate(
        [wmu_bd, zc, wsg_bd, zc, wge_bd, zc, wgd_big, zc, wb_pad, zc], axis=1)  # (96, 640)

    zb = jnp.zeros((1, 32), f32)
    bias_row = jnp.concatenate(
        [params["b_mu"].reshape(1, TH), zb,
         params["b_sigma"].reshape(1, TH), zb,
         params["b_Ge"].reshape(1, TH), zb,
         (T - 1) * params["b_Gd"].reshape(1, TH), zb,     # T-1 transfers add b_Gd[i]
         params["b_base"].reshape(1, TH), zb], axis=1)                   # (1, 640)

    w_slab = jnp.concatenate(
        [w_rows, bias_row, jnp.zeros((7, 640), f32)], axis=0)            # (104, 640)

    vmem = pl.BlockSpec(memory_space=pltpu.MemorySpace.VMEM)
    out = pl.pallas_call(
        amtl_kernel,
        out_shape=jax.ShapeDtypeStruct((TB, 128), f32),
        in_specs=[vmem, vmem],
        out_specs=vmem,
    )(act_slab, w_slab)

    loss_wo = out[:, 0:1].reshape(T, B, 1)
    loss_wt = out[:, 1:2].reshape(T, B, 1)
    pred_wo = out[:, 2:3].reshape(T, B, 1)
    pred_wt = out[:, 3:4].reshape(T, B, 1)
    return loss_wo, loss_wt, pred_wo, pred_wt


# ---- pure-JAX reference (for verification) -----------------------------------
def amtl_reference(params, x, y, eps, eps_b):
    T = x.shape[0]
    HI = jax.lax.Precision.HIGHEST

    def lin(a, w, b):
        return jnp.dot(a, w, precision=HI) + b

    hid, loss_wo, pred_wo = [], [], []
    for i in range(T):
        h = jnp.maximum(lin(x[i], params["w_base"][i], params["b_base"][i]), 0.0)
        mu = lin(h, params["w_mu"][i], params["b_mu"][i])
        sg = jax.nn.softplus(lin(h, params["w_sigma"][i], params["b_sigma"][i]))
        hd = mu + sg * eps[i]
        p = jax.nn.sigmoid(jnp.dot(hd, params["w_out_wo"][i], precision=HI)
                           + params["b_out_wo"][i])
        hid.append(hd); pred_wo.append(p); loss_wo.append(_bce(p, y[i]))

    loss_wt, pred_wt = [], []
    for i in range(T):
        combine = hid[i]
        for j in range(T):
            if i == j:
                continue
            bh = jnp.maximum(lin(x[i], params["w_base"][j], params["b_base"][j]), 0.0)
            bmu = lin(bh, params["w_mu"][j], params["b_mu"][j])
            bsg = lin(bh, params["w_sigma"][j], params["b_sigma"][j])   # no softplus (as in torch)
            bhid = bmu + bsg * eps_b[i, j]
            idx = i * T + j
            tw = jax.nn.sigmoid(jnp.mean(loss_wo[i]) * params["w_F"][2 * idx]
                                + jnp.mean(loss_wo[j]) * params["w_F"][2 * idx + 1]
                                + params["b_F"][idx])
            enc = lin(bhid, params["w_Ge"][j], params["b_Ge"][j])
            dec = lin(tw * enc, params["w_Gd"][i], params["b_Gd"][i])
            combine = combine + dec
        p = jax.nn.sigmoid(jnp.dot(combine, params["w_out_wt"][i], precision=HI)
                           + params["b_out_wt"][i])
        pred_wt.append(p); loss_wt.append(_bce(p, y[i]))

    return (jnp.stack(loss_wo), jnp.stack(loss_wt),
            jnp.stack(pred_wo), jnp.stack(pred_wt))


# ---- deterministic parameter init (PyTorch-style uniform) ---------------------
def init_params(key):
    T, D, H = NUM_TASKS, INPUT_DIM, HIDDEN_DIM
    keys = iter(jax.random.split(key, 64))

    def u(shape, fan_in):
        bound = 1.0 / np.sqrt(fan_in)
        return jax.random.uniform(next(keys), shape, jnp.float32, -bound, bound)

    return {
        "w_base":   u((T, D, H), D),  "b_base":   u((T, 1, H), D),
        "w_mu":     u((T, H, H), H),  "b_mu":     u((T, 1, H), H),
        "w_sigma":  u((T, H, H), H),  "b_sigma":  u((T, 1, H), H),
        "w_out_wo": u((T, H, 1), H),  "b_out_wo": u((T,), H),
        "w_out_wt": u((T, H, 1), H),  "b_out_wt": u((T,), H),
        "w_F":      u((T * T * 2,), 2), "b_F":    u((T * T,), 2),
        "w_Ge":     u((T, H, H), H),  "b_Ge":     u((T, 1, H), H),
        "w_Gd":     u((T, H, H), H),  "b_Gd":     u((T, 1, H), H),
    }


if __name__ == "__main__":
    key = jax.random.PRNGKey(0)
    k_par, k_x, k_y, k_e, k_eb = jax.random.split(key, 5)

    params = init_params(k_par)
    x = jax.random.normal(k_x, (NUM_TASKS, BATCH, INPUT_DIM), jnp.float32)
    y = jax.random.bernoulli(k_y, 0.5, (NUM_TASKS, BATCH, 1)).astype(jnp.float32)
    # torch samples epsilon ~ Normal(0,1) in-forward; we pre-sample deterministically
    # (one draw per task for pass 1, one per (i, j) pair for pass 2) and pass it in.
    eps = jax.random.normal(k_e, (NUM_TASKS, 1, HIDDEN_DIM), jnp.float32)
    eps_b = jax.random.normal(k_eb, (NUM_TASKS, NUM_TASKS, 1, HIDDEN_DIM), jnp.float32)

    outs = amtl_forward(params, x, y, eps, eps_b)
    outs = jax.block_until_ready(outs)

    refs = amtl_reference(params, x, y, eps, eps_b)
    refs = jax.block_until_ready(refs)

    for o, r in zip(outs, refs):
        np.testing.assert_allclose(np.asarray(o), np.asarray(r), rtol=1e-2, atol=1e-2)

    print("KERNEL_OK")
</pallas_src>

<mosaic_0001>
module attributes {stable_mosaic.version = 11 : i64} {
  func.func @amtl_kernel(%arg0: memref<192x96xf32, #tpu.memory_space<vmem>>, %arg1: memref<104x640xf32, #tpu.memory_space<vmem>>, %arg2: memref<24x128xf32, #tpu.memory_space<vmem>>) attributes {dimension_semantics = [], scalar_prefetch = 0 : i64, scratch_operands = 0 : i64, tpu.core_type = #tpu.core_type<tc>} {
    %c0 = arith.constant 0 : index
    %c0_0 = arith.constant 0 : index
    %0 = vector.load %arg0[%c0, %c0_0] : memref<192x96xf32, #tpu.memory_space<vmem>>, vector<24x96xf32>
    %c24 = arith.constant 24 : index
    %c0_1 = arith.constant 0 : index
    %1 = vector.load %arg0[%c24, %c0_1] : memref<192x96xf32, #tpu.memory_space<vmem>>, vector<24x96xf32>
    %c48 = arith.constant 48 : index
    %c0_2 = arith.constant 0 : index
    %2 = vector.load %arg0[%c48, %c0_2] : memref<192x96xf32, #tpu.memory_space<vmem>>, vector<24x96xf32>
    %c72 = arith.constant 72 : index
    %c0_3 = arith.constant 0 : index
    %3 = vector.load %arg0[%c72, %c0_3] : memref<192x96xf32, #tpu.memory_space<vmem>>, vector<24x96xf32>
    %c96 = arith.constant 96 : index
    %c0_4 = arith.constant 0 : index
    %4 = vector.load %arg0[%c96, %c0_4] : memref<192x96xf32, #tpu.memory_space<vmem>>, vector<24x96xf32>
    %c120 = arith.constant 120 : index
    %c0_5 = arith.constant 0 : index
    %5 = vector.load %arg0[%c120, %c0_5] : memref<192x96xf32, #tpu.memory_space<vmem>>, vector<24x96xf32>
    %c144 = arith.constant 144 : index
    %c0_6 = arith.constant 0 : index
    %6 = vector.load %arg0[%c144, %c0_6] : memref<192x96xf32, #tpu.memory_space<vmem>>, vector<24x96xf32>
    %c168 = arith.constant 168 : index
    %c0_7 = arith.constant 0 : index
    %7 = vector.load %arg0[%c168, %c0_7] : memref<192x96xf32, #tpu.memory_space<vmem>>, vector<24x96xf32>
    %8 = vector.extract_strided_slice %0 {offsets = [0, 0], sizes = [24, 1], strides = [1, 1]} : vector<24x96xf32> to vector<24x1xf32>
    %9 = vector.extract_strided_slice %0 {offsets = [0, 1], sizes = [24, 1], strides = [1, 1]} : vector<24x96xf32> to vector<24x1xf32>
    %10 = vector.extract_strided_slice %0 {offsets = [0, 2], sizes = [24, 1], strides = [1, 1]} : vector<24x96xf32> to vector<24x1xf32>
    %c0_8 = arith.constant 0 : index
    %c512 = arith.constant 512 : index
    %11 = vector.load %arg1[%c0_8, %c512] : memref<104x640xf32, #tpu.memory_space<vmem>>, vector<96x96xf32>
    %c96_9 = arith.constant 96 : index
    %c512_10 = arith.constant 512 : index
    %12 = vector.load %arg1[%c96_9, %c512_10] : memref<104x640xf32, #tpu.memory_space<vmem>>, vector<1x96xf32>
    %cst = arith.constant dense<0.000000e+00> : vector<24x96xf32>
    %13 = tpu.matmul %0, %11, %cst {dimension_numbers = #tpu.dot_dimension_numbers<[1], [0], [0], [1], [0, 0, 1, 1], [], []>} : vector<24x96xf32>, vector<96x96xf32>, vector<24x96xf32> -> vector<24x96xf32>
    %14 = vector.broadcast %12 : vector<1x96xf32> to vector<24x96xf32>
    %15 = arith.addf %13, %14 : vector<24x96xf32>
    %cst_11 = arith.constant 0.000000e+00 : f32
    %16 = vector.broadcast %cst_11 : f32 to vector<24x96xf32>
    %17 = arith.maximumf %15, %16 : vector<24x96xf32>
    %c0_12 = arith.constant 0 : index
    %c0_13 = arith.constant 0 : index
    %18 = vector.load %arg1[%c0_12, %c0_13] : memref<104x640xf32, #tpu.memory_space<vmem>>, vector<96x96xf32>
    %c96_14 = arith.constant 96 : index
    %c0_15 = arith.constant 0 : index
    %19 = vector.load %arg1[%c96_14, %c0_15] : memref<104x640xf32, #tpu.memory_space<vmem>>, vector<1x96xf32>
    %cst_16 = arith.constant dense<0.000000e+00> : vector<24x96xf32>
    %20 = tpu.matmul %17, %18, %cst_16 {dimension_numbers = #tpu.dot_dimension_numbers<[1], [0], [0], [1], [0, 0, 1, 1], [], []>} : vector<24x96xf32>, vector<96x96xf32>, vector<24x96xf32> -> vector<24x96xf32>
    %21 = vector.broadcast %19 : vector<1x96xf32> to vector<24x96xf32>
    %22 = arith.addf %20, %21 : vector<24x96xf32>
    %c0_17 = arith.constant 0 : index
    %c128 = arith.constant 128 : index
    %23 = vector.load %arg1[%c0_17, %c128] : memref<104x640xf32, #tpu.memory_space<vmem>>, vector<96x96xf32>
    %c96_18 = arith.constant 96 : index
    %c128_19 = arith.constant 128 : index
    %24 = vector.load %arg1[%c96_18, %c128_19] : memref<104x640xf32, #tpu.memory_space<vmem>>, vector<1x96xf32>
    %cst_20 = arith.constant dense<0.000000e+00> : vector<24x96xf32>
    %25 = tpu.matmul %17, %23, %cst_20 {dimension_numbers = #tpu.dot_dimension_numbers<[1], [0], [0], [1], [0, 0, 1, 1], [], []>} : vector<24x96xf32>, vector<96x96xf32>, vector<24x96xf32> -> vector<24x96xf32>
    %26 = vector.broadcast %24 : vector<1x96xf32> to vector<24x96xf32>
    %27 = arith.addf %25, %26 : vector<24x96xf32>
    %cst_21 = arith.constant 5.000000e-01 : f32
    %28 = vector.broadcast %cst_21 : f32 to vector<24x96xf32>
    %29 = arith.cmpf ogt, %7, %28 : vector<24x96xf32>
    %cst_22 = arith.constant 0.000000e+00 : f32
    %30 = vector.broadcast %cst_22 : f32 to vector<24x96xf32>
    %31 = arith.maximumf %27, %30 : vector<24x96xf32>
    %32 = vector.broadcast %cst_22 : f32 to vector<24x96xf32>
    %33 = arith.subf %27, %32 : vector<24x96xf32>
    %34 = arith.cmpf one, %33, %33 : vector<24x96xf32>
    %35 = vector.broadcast %cst_22 : f32 to vector<24x96xf32>
    %36 = arith.addf %27, %35 : vector<24x96xf32>
    %37 = math.absf %33 : vector<24x96xf32>
    %cst_23 = arith.constant 0.000000e+00 : f32
    %38 = vector.broadcast %cst_23 : f32 to vector<24x96xf32>
    %39 = arith.subf %38, %37 : vector<24x96xf32>
    %40 = math.exp %39 : vector<24x96xf32>
    %41 = math.log1p %40 : vector<24x96xf32>
    %42 = arith.addf %31, %41 : vector<24x96xf32>
    %43 = arith.select %34, %36, %42 : vector<24x96xi1>, vector<24x96xf32>
    %44 = arith.select %29, %43, %27 : vector<24x96xi1>, vector<24x96xf32>
    %45 = arith.mulf %44, %1 : vector<24x96xf32>
    %46 = arith.addf %22, %45 : vector<24x96xf32>
    %47 = arith.mulf %46, %2 : vector<24x96xf32>
    %cst_24 = arith.constant dense<0.000000e+00> : vector<24xf32>
    %48 = vector.multi_reduction <add>, %47, %cst_24 [1] : vector<24x96xf32> to vector<24xf32>
    %49 = vector.shape_cast %48 : vector<24xf32> to vector<24x1xf32>
    %50 = arith.addf %49, %9 : vector<24x1xf32>
    %51 = arith.negf %50 : vector<24x1xf32>
    %52 = math.exp %51 : vector<24x1xf32>
    %cst_25 = arith.constant 1.000000e+00 : f32
    %53 = vector.broadcast %cst_25 : f32 to vector<24x1xf32>
    %54 = arith.addf %53, %52 : vector<24x1xf32>
    %55 = arith.divf %53, %54 : vector<24x1xf32>
    %56 = math.log %55 : vector<24x1xf32>
    %cst_26 = arith.constant -1.000000e+02 : f32
    %57 = vector.broadcast %cst_26 : f32 to vector<24x1xf32>
    %58 = arith.maximumf %56, %57 : vector<24x1xf32>
    %cst_27 = arith.constant 1.000000e+00 : f32
    %59 = vector.broadcast %cst_27 : f32 to vector<24x1xf32>
    %60 = arith.subf %59, %55 : vector<24x1xf32>
    %61 = math.log %60 : vector<24x1xf32>
    %cst_28 = arith.constant -1.000000e+02 : f32
    %62 = vector.broadcast %cst_28 : f32 to vector<24x1xf32>
    %63 = arith.maximumf %61, %62 : vector<24x1xf32>
    %64 = arith.mulf %8, %58 : vector<24x1xf32>
    %cst_29 = arith.constant 1.000000e+00 : f32
    %65 = vector.broadcast %cst_29 : f32 to vector<24x1xf32>
    %66 = arith.subf %65, %8 : vector<24x1xf32>
    %67 = arith.mulf %66, %63 : vector<24x1xf32>
    %68 = arith.addf %64, %67 : vector<24x1xf32>
    %cst_30 = arith.constant 0.000000e+00 : f32
    %69 = vector.broadcast %cst_30 : f32 to vector<24x1xf32>
    %70 = arith.subf %69, %68 : vector<24x1xf32>
    %71 = vector.broadcast %70 : vector<24x1xf32> to vector<24x96xf32>
    %72 = arith.mulf %71, %7 : vector<24x96xf32>
    %cst_31 = arith.constant dense<0.000000e+00> : vector<96xf32>
    %73 = vector.multi_reduction <add>, %72, %cst_31 [0] : vector<24x96xf32> to vector<96xf32>
    %74 = vector.shape_cast %73 : vector<96xf32> to vector<1x96xf32>
    %cst_32 = arith.constant 1.250000e-01 : f32
    %75 = vector.broadcast %cst_32 : f32 to vector<1x96xf32>
    %76 = arith.mulf %74, %75 : vector<1x96xf32>
    %77 = vector.broadcast %76 : vector<1x96xf32> to vector<24x96xf32>
    %78 = arith.mulf %7, %77 : vector<24x96xf32>
    %cst_33 = arith.constant dense<0.000000e+00> : vector<24xf32>
    %79 = vector.multi_reduction <add>, %78, %cst_33 [1] : vector<24x96xf32> to vector<24xf32>
    %80 = vector.shape_cast %79 : vector<24xf32> to vector<24x1xf32>
    %cst_34 = arith.constant 3.125000e-02 : f32
    %81 = vector.broadcast %cst_34 : f32 to vector<24x1xf32>
    %82 = arith.mulf %80, %81 : vector<24x1xf32>
    %83 = vector.broadcast %82 : vector<24x1xf32> to vector<24x96xf32>
    %84 = arith.mulf %83, %4 : vector<24x96xf32>
    %85 = vector.broadcast %76 : vector<1x96xf32> to vector<24x96xf32>
    %86 = arith.mulf %85, %5 : vector<24x96xf32>
    %87 = arith.addf %84, %86 : vector<24x96xf32>
    %88 = arith.addf %87, %6 : vector<24x96xf32>
    %89 = arith.negf %88 : vector<24x96xf32>
    %90 = math.exp %89 : vector<24x96xf32>
    %cst_35 = arith.constant 1.000000e+00 : f32
    %91 = vector.broadcast %cst_35 : f32 to vector<24x96xf32>
    %92 = arith.addf %91, %90 : vector<24x96xf32>
    %93 = arith.divf %91, %92 : vector<24x96xf32>
    %cst_36 = arith.constant 1.000000e+00 : f32
    %94 = vector.broadcast %cst_36 : f32 to vector<24x96xf32>
    %95 = arith.subf %94, %7 : vector<24x96xf32>
    %96 = arith.mulf %93, %95 : vector<24x96xf32>
    %c0_37 = arith.constant 0 : index
    %c256 = arith.constant 256 : index
    %97 = vector.load %arg1[%c0_37, %c256] : memref<104x640xf32, #tpu.memory_space<vmem>>, vector<96x96xf32>
    %c96_38 = arith.constant 96 : index
    %c256_39 = arith.constant 256 : index
    %98 = vector.load %arg1[%c96_38, %c256_39] : memref<104x640xf32, #tpu.memory_space<vmem>>, vector<1x96xf32>
    %cst_40 = arith.constant dense<0.000000e+00> : vector<24x96xf32>
    %99 = tpu.matmul %46, %97, %cst_40 {dimension_numbers = #tpu.dot_dimension_numbers<[1], [0], [0], [1], [0, 0, 1, 1], [], []>} : vector<24x96xf32>, vector<96x96xf32>, vector<24x96xf32> -> vector<24x96xf32>
    %100 = vector.broadcast %98 : vector<1x96xf32> to vector<24x96xf32>
    %101 = arith.addf %99, %100 : vector<24x96xf32>
    %102 = arith.mulf %96, %101 : vector<24x96xf32>
    %c0_41 = arith.constant 0 : index
    %c384 = arith.constant 384 : index
    %103 = vector.load %arg1[%c0_41, %c384] : memref<104x640xf32, #tpu.memory_space<vmem>>, vector<96x96xf32>
    %c96_42 = arith.constant 96 : index
    %c384_43 = arith.constant 384 : index
    %104 = vector.load %arg1[%c96_42, %c384_43] : memref<104x640xf32, #tpu.memory_space<vmem>>, vector<1x96xf32>
    %cst_44 = arith.constant dense<0.000000e+00> : vector<24x96xf32>
    %105 = tpu.matmul %102, %103, %cst_44 {dimension_numbers = #tpu.dot_dimension_numbers<[1], [0], [0], [1], [0, 0, 1, 1], [], []>} : vector<24x96xf32>, vector<96x96xf32>, vector<24x96xf32> -> vector<24x96xf32>
    %106 = vector.broadcast %104 : vector<1x96xf32> to vector<24x96xf32>
    %107 = arith.addf %105, %106 : vector<24x96xf32>
    %108 = arith.addf %46, %107 : vector<24x96xf32>
    %109 = arith.mulf %108, %3 : vector<24x96xf32>
    %cst_45 = arith.constant dense<0.000000e+00> : vector<24xf32>
    %110 = vector.multi_reduction <add>, %109, %cst_45 [1] : vector<24x96xf32> to vector<24xf32>
    %111 = vector.shape_cast %110 : vector<24xf32> to vector<24x1xf32>
    %112 = arith.addf %111, %10 : vector<24x1xf32>
    %113 = arith.negf %112 : vector<24x1xf32>
    %114 = math.exp %113 : vector<24x1xf32>
    %cst_46 = arith.constant 1.000000e+00 : f32
    %115 = vector.broadcast %cst_46 : f32 to vector<24x1xf32>
    %116 = arith.addf %115, %114 : vector<24x1xf32>
    %117 = arith.divf %115, %116 : vector<24x1xf32>
    %118 = math.log %117 : vector<24x1xf32>
    %cst_47 = arith.constant -1.000000e+02 : f32
    %119 = vector.broadcast %cst_47 : f32 to vector<24x1xf32>
    %120 = arith.maximumf %118, %119 : vector<24x1xf32>
    %cst_48 = arith.constant 1.000000e+00 : f32
    %121 = vector.broadcast %cst_48 : f32 to vector<24x1xf32>
    %122 = arith.subf %121, %117 : vector<24x1xf32>
    %123 = math.log %122 : vector<24x1xf32>
    %cst_49 = arith.constant -1.000000e+02 : f32
    %124 = vector.broadcast %cst_49 : f32 to vector<24x1xf32>
    %125 = arith.maximumf %123, %124 : vector<24x1xf32>
    %126 = arith.mulf %8, %120 : vector<24x1xf32>
    %cst_50 = arith.constant 1.000000e+00 : f32
    %127 = vector.broadcast %cst_50 : f32 to vector<24x1xf32>
    %128 = arith.subf %127, %8 : vector<24x1xf32>
    %129 = arith.mulf %128, %125 : vector<24x1xf32>
    %130 = arith.addf %126, %129 : vector<24x1xf32>
    %cst_51 = arith.constant 0.000000e+00 : f32
    %131 = vector.broadcast %cst_51 : f32 to vector<24x1xf32>
    %132 = arith.subf %131, %130 : vector<24x1xf32>
    %133 = tpu.iota {dimensions = array<i32: 1>} : vector<24x128xi32>
    %c0_i32 = arith.constant 0 : i32
    %134 = vector.broadcast %c0_i32 : i32 to vector<24x128xi32>
    %135 = arith.cmpi eq, %133, %134 : vector<24x128xi32>
    %cst_52 = arith.constant 0.000000e+00 : f32
    %136 = vector.shape_cast %70 : vector<24x1xf32> to vector<24x1xf32>
    %137 = vector.broadcast %136 : vector<24x1xf32> to vector<24x128xf32>
    %138 = vector.broadcast %cst_52 : f32 to vector<24x128xf32>
    %139 = arith.select %135, %137, %138 : vector<24x128xi1>, vector<24x128xf32>
    %c1_i32 = arith.constant 1 : i32
    %140 = vector.broadcast %c1_i32 : i32 to vector<24x128xi32>
    %141 = arith.cmpi eq, %133, %140 : vector<24x128xi32>
    %cst_53 = arith.constant 0.000000e+00 : f32
    %142 = vector.shape_cast %132 : vector<24x1xf32> to vector<24x1xf32>
    %143 = vector.broadcast %142 : vector<24x1xf32> to vector<24x128xf32>
    %144 = vector.broadcast %cst_53 : f32 to vector<24x128xf32>
    %145 = arith.select %141, %143, %144 : vector<24x128xi1>, vector<24x128xf32>
    %146 = arith.addf %139, %145 : vector<24x128xf32>
    %c2_i32 = arith.constant 2 : i32
    %147 = vector.broadcast %c2_i32 : i32 to vector<24x128xi32>
    %148 = arith.cmpi eq, %133, %147 : vector<24x128xi32>
    %cst_54 = arith.constant 0.000000e+00 : f32
    %149 = vector.shape_cast %55 : vector<24x1xf32> to vector<24x1xf32>
    %150 = vector.broadcast %149 : vector<24x1xf32> to vector<24x128xf32>
    %151 = vector.broadcast %cst_54 : f32 to vector<24x128xf32>
    %152 = arith.select %148, %150, %151 : vector<24x128xi1>, vector<24x128xf32>
    %153 = arith.addf %146, %152 : vector<24x128xf32>
    %c3_i32 = arith.constant 3 : i32
    %154 = vector.broadcast %c3_i32 : i32 to vector<24x128xi32>
    %155 = arith.cmpi eq, %133, %154 : vector<24x128xi32>
    %cst_55 = arith.constant 0.000000e+00 : f32
    %156 = vector.shape_cast %117 : vector<24x1xf32> to vector<24x1xf32>
    %157 = vector.broadcast %156 : vector<24x1xf32> to vector<24x128xf32>
    %158 = vector.broadcast %cst_55 : f32 to vector<24x128xf32>
    %159 = arith.select %155, %157, %158 : vector<24x128xi1>, vector<24x128xf32>
    %160 = arith.addf %153, %159 : vector<24x128xf32>
    %c0_56 = arith.constant 0 : index
    %c0_57 = arith.constant 0 : index
    %161 = vector.load %arg2[%c0_56, %c0_57] : memref<24x128xf32, #tpu.memory_space<vmem>>, vector<24x128xf32>
    tpu.vector_store %arg2[%c0_56, %c0_57], %160 {strides = array<i32>} : memref<24x128xf32, #tpu.memory_space<vmem>>, vector<24x128xf32>,
    return
  }
}

</mosaic_0001>

<bundles_post_ra>
// kernel: mul.69
= control target key start
LH: loop header
LB: loop body
LE: loop exit
PB: predicated region body
PF: predicated region fallthrough
CT: control target
= control target key end

     0   :  { %vm8_vm0 = vcmask 261120   ;;  %s33_s8 = smov 32   ;;  %vm14_vm1 = vcmask 785920   ;;  %vm20_vm2 = vcmask 523520   ;;  %s50_s0 = inlined_call_operand.vmem [shape: f32[3,32], index: 0, kind: input, shape index: {}]   ;;  %s51_s1 = inlined_call_operand.vmem [shape: f32[96], index: 1, kind: output, shape index: {}]  }
   0x1   :  { %v5_v0 = vld [vmem:[%s50_s0] sm:$0xf]  ;;  %s32_s0 = smov 64  }
   0x2   :  { %6 = vst [vmem:[#allocation1] sm:$0xf] %v5_v0 }
   0x9   :  { %v11_v1 = vld [vmem:[#allocation1 + $0x2] sm:$0x1]   ;;  %v7_v2 = vld [vmem:[#allocation1] sm:$0x1]   ;;  %v17_v3 = vld [vmem:[#allocation1 + $0x1] sm:$0x1]  }
   0xa   :  { %12 = vrot.lane.b32.xlu0 %v11_v1, %s32_s0  ;;  %9 = vst.msk [vmem:[#allocation0] sm:$0x1] %vm8_vm0, %v7_v2  }
   0xe   :  { %18 = vrot.lane.b32.xlu0 %v17_v3, %s33_s8 }
  0x7c   :  { %v13_v4 = vpop.permute.xlu0 %12  }
  0x7d   :  { %15 = vst.msk [vmem:[#allocation0] sm:$0x1] %vm14_vm1, %v13_v4  }
  0x80   :  { %v19_v5 = vpop.permute.xlu0 %18  }
  0x81   :  { %21 = vst.msk [vmem:[#allocation0] sm:$0x1] %vm20_vm2, %v19_v5  }
  0x88   :  { %v26_v6 = vld [vmem:[#allocation0] sm:$0x1] }
  0x89   :  { %29 = vst [vmem:[%s51_s1] sm:$0x1] %v26_v6 }

// kernel: mul.1
= control target key start
LH: loop header
LB: loop body
LE: loop exit
PB: predicated region body
PF: predicated region fallthrough
CT: control target
= control target key end

     0   :  { %vm8_vm0 = vcmask 23552   ;;  %s33_s8 = smov 122   ;;  %s50_s0 = inlined_call_operand.vmem [shape: f32[9], index: 0, kind: input, shape index: {}]   ;;  %s51_s1 = inlined_call_operand.vmem [shape: f32[3,3], index: 1, kind: output, shape index: {}]  }
   0x1   :  { %v5_v0 = vld [vmem:[%s50_s0] sm:$0x1]  ;;  %s32_s0 = smov 125  }
   0x2   :  { %6 = vst [vmem:[#allocation1] sm:$0x1] %v5_v0 }
   0x9   :  { %v10_v1 = vld [vmem:[#allocation1] sm:$0x1]  }
   0xa   :  { %v7_v2 = vld [vmem:[#allocation1] sm:$0x1]   ;;  %11 = vrot.lane.b32.xlu0 %v10_v1, %s32_s0 }
   0xb   :  { %9 = vst.msk [vmem:[#allocation0] sm:$0x1] %vm8_vm0, %v7_v2   ;;  %v16_v3 = vld [vmem:[#allocation1] sm:$0x1]  }
   0xe   :  { %17 = vrot.lane.b32.xlu0 %v16_v3, %s33_s8 }
  0x7c   :  { %v12_v4 = vpop.permute.xlu0 %11  }
  0x7d   :  { %15 = vst.msk [vmem:[#allocation0 + $0x1] sm:$0x1] %vm8_vm0, %v12_v4  }
  0x80   :  { %v18_v5 = vpop.permute.xlu0 %17  }
  0x81   :  { %21 = vst.msk [vmem:[#allocation0 + $0x2] sm:$0x1] %vm8_vm0, %v18_v5  }
  0x88   :  { %v26_v6 = vld [vmem:[#allocation0] sm:$0xf] }
  0x89   :  { %29 = vst [vmem:[%s51_s1] sm:$0xf] %v26_v6 }

// kernel: amtl_forward.1
= control target key start
LH: loop header
LB: loop body
LE: loop exit
PB: predicated region body
PF: predicated region fallthrough
CT: control target
= control target key end

     0   :  { %v1335_v0 = vmov 0.0   ;;  %vm1336_vm0 = vmmov 0   ;;  %vm48_vm1 = vcmask 785408   ;;  %s1338_s23 = smov 127   ;;  %s1340_s19 = smov 126   ;;  %s1940_s1 = inlined_call_operand.vmem [shape: f32[104,640], index: 1, kind: input, shape index: {}]   ;;  %s1941_s0 = inlined_call_operand.vmem [shape: f32[192,96], index: 0, kind: input, shape index: {}]   ;;  %s1942_s2 = inlined_call_operand.vmem [shape: f32[24,128], index: 2, kind: output, shape index: {}]  }
   0x1   :  { %1054 = vmatprep.subr.mxu0 %v1335_v0  ;;  %v46_v1 = vld [vmem:[%s1940_s1 + $0x1d8] sm:$0xff]  ;;  %v45_v2 = vld [vmem:[%s1940_s1 + $0x1b0] sm:$0xff]  ;;  %1078 = vmatprep.mubr.msk.f32.mxu0 %vm1336_vm0, %v1335_v0  ;;  %v44_v3 = vld [vmem:[%s1940_s1 + $0x188] sm:$0xff] }
   0x2   :  { %1055 = vmatpush3.msra.mxu0 %v46_v1  ;;  %1087 = vmatprep.subr.mxu1 %v1335_v0  ;;  %v43_v4 = vld [vmem:[%s1940_s1 + $0x160] sm:$0xff]  ;;  %v152_v5 = vld [vmem:[%s1940_s1 + $0x1b8] sm:$0xff]  ;;  %v151_v6 = vld [vmem:[%s1940_s1 + $0x190] sm:$0xff] }
   0x3   :  { %1056 = vmatprep.subr.mxu0 %v1335_v0  ;;  %1111 = vmatprep.mubr.msk.f32.mxu1 %vm1336_vm0, %v1335_v0  ;;  %v42_v7 = vld [vmem:[%s1940_s1 + $0x138] sm:$0xff]  ;;  %v150_v8 = vld [vmem:[%s1940_s1 + $0x168] sm:$0xff]  ;;  %v41_v9 = vld [vmem:[%s1940_s1 + $0x110] sm:$0xff] }
   0x4   :  { %1057 = vmatpush3.msra.mxu0 %v45_v2  ;;  %1088 = vmatpush3.msra.mxu1 %v152_v5  ;;  %v149_v10 = vld [vmem:[%s1940_s1 + $0x140] sm:$0xff]  ;;  %v40_v11 = vld [vmem:[%s1940_s1 + $0xe8] sm:$0xff]  ;;  %v148_v12 = vld [vmem:[%s1940_s1 + $0x118] sm:$0xff] }
   0x5   :  { %1058 = vmatprep.subr.mxu0 %v1335_v0  ;;  %1089 = vmatprep.subr.mxu1 %v1335_v0  ;;  %v39_v13 = vld [vmem:[%s1940_s1 + $0xc0] sm:$0xff]  ;;  %v147_v14 = vld [vmem:[%s1940_s1 + $0xf0] sm:$0xff]  ;;  %v38_v15 = vld [vmem:[%s1940_s1 + $0x98] sm:$0xff] }
   0x6   :  { %1059 = vmatpush3.msra.mxu0 %v44_v3  ;;  %1090 = vmatpush3.msra.mxu1 %v151_v6  ;;  %v146_v16 = vld [vmem:[%s1940_s1 + $0xc8] sm:$0xff]  ;;  %v37_v17 = vld [vmem:[%s1940_s1 + $0x70] sm:$0xff]  ;;  %v145_v18 = vld [vmem:[%s1940_s1 + $0xa0] sm:$0xff] }
   0x7   :  { %1060 = vmatprep.subr.mxu0 %v1335_v0  ;;  %1091 = vmatprep.subr.mxu1 %v1335_v0  ;;  %v36_v19 = vld [vmem:[%s1940_s1 + $0x48] sm:$0xff]  ;;  %v144_v20 = vld [vmem:[%s1940_s1 + $0x78] sm:$0xff]  ;;  %v35_v21 = vld [vmem:[%s1940_s1 + $0x20] sm:$0xff] }
   0x8   :  { %1061 = vmatpush3.msra.mxu0 %v43_v4  ;;  %1092 = vmatpush3.msra.mxu1 %v150_v8  ;;  %v1446_v22 = vld [vmem:[%s1941_s0] sm:$0xff]  ;;  %v253_v24 = vld [vmem:[%s1940_s1 + $0x198] sm:$0xff]  ;;  %v1465_v25 = vld [vmem:[%s1941_s0 + $0x8] sm:$0xff] }
   0x9   :  { %1062 = vmatprep.subr.mxu0 %v1335_v0  ;;  %1093 = vmatprep.subr.mxu1 %v1335_v0  ;;  %v254_v23 = vld [vmem:[%s1940_s1 + $0x1c0] sm:$0xff]  ;;  %v252_v26 = vld [vmem:[%s1940_s1 + $0x170] sm:$0xff]  ;;  %v251_v27 = vld [vmem:[%s1940_s1 + $0x148] sm:$0xff] }
   0xa   :  { %1063 = vmatpush3.msra.mxu0 %v42_v7  ;;  %1094 = vmatpush3.msra.mxu1 %v149_v10  ;;  %v1482_v28 = vld [vmem:[%s1941_s0 + $0x10] sm:$0xff]  ;;  %v250_v29 = vld [vmem:[%s1940_s1 + $0x120] sm:$0xff]  ;;  %v249_v30 = vld [vmem:[%s1940_s1 + $0xf8] sm:$0xff] }
   0xb   :  { %1064 = vmatprep.subr.mxu0 %v1335_v0  ;;  %1095 = vmatprep.subr.mxu1 %v1335_v0  ;;  %v248_v31 = vld [vmem:[%s1940_s1 + $0xd0] sm:$0xff]  ;;  %v247_v32 = vld [vmem:[%s1940_s1 + $0xa8] sm:$0xff]  ;;  %v246_v33 = vld [vmem:[%s1940_s1 + $0x80] sm:$0xff] }
   0xc   :  { %1065 = vmatpush3.msra.mxu0 %v41_v9  ;;  %1096 = vmatpush3.msra.mxu1 %v148_v12  ;;  %v143_v34 = vld [vmem:[%s1940_s1 + $0x50] sm:$0xff]  ;;  %v245_v35 = vld [vmem:[%s1940_s1 + $0x58] sm:$0xff]  ;;  %v142_v36 = vld [vmem:[%s1940_s1 + $0x28] sm:$0xff] }
   0xd   :  { %1066 = vmatprep.subr.mxu0 %v1335_v0  ;;  %1097 = vmatprep.subr.mxu1 %v1335_v0  ;;  %v244_v37 = vld [vmem:[%s1940_s1 + $0x30] sm:$0xff]  ;;  %v141_v38 = vld [vmem:[%s1940_s1] sm:$0xff]  ;;  %v243_v39 = vld [vmem:[%s1940_s1 + $0x8] sm:$0xff] }
   0xe   :  { %1067 = vmatpush3.msra.mxu0 %v40_v11  ;;  %1098 = vmatpush3.msra.mxu1 %v147_v14  ;;  %v47_v40 = vld [vmem:[%s1940_s1 + $0x200] ss:$0 sm:$0xff]  ;;  %v587_v53 = vld [vmem:[%s1940_s1 + $0x1c8] sm:$0xff]  ;;  %v585_v55 = vld [vmem:[%s1940_s1 + $0x178] sm:$0xff] }
   0xf   :  { %1068 = vmatprep.subr.mxu0 %v1335_v0  ;;  %1099 = vmatprep.subr.mxu1 %v1335_v0  ;;  %v586_v54 = vld [vmem:[%s1940_s1 + $0x1a0] sm:$0xff]  ;;  %v584_v56 = vld [vmem:[%s1940_s1 + $0x150] sm:$0xff]  ;;  %v583_v57 = vld [vmem:[%s1940_s1 + $0x128] sm:$0xff] }
  0x10   :  { %1069 = vmatpush3.msra.mxu0 %v39_v13  ;;  %1100 = vmatpush3.msra.mxu1 %v146_v16  ;;  %v582_v58 = vld [vmem:[%s1940_s1 + $0x100] sm:$0xff]  ;;  %v581_v59 = vld [vmem:[%s1940_s1 + $0xd8] sm:$0xff]  ;;  %v580_v60 = vld [vmem:[%s1940_s1 + $0xb0] sm:$0xff] }
  0x11   :  { %1070 = vmatprep.subr.mxu0 %v1335_v0  ;;  %1101 = vmatprep.subr.mxu1 %v1335_v0  ;;  %v579_v61 = vld [vmem:[%s1940_s1 + $0x88] sm:$0xff]  ;;  %v578_v62 = vld [vmem:[%s1940_s1 + $0x60] sm:$0xff]  ;;  %v577_v63 = vld [vmem:[%s1940_s1 + $0x38] sm:$0xff] }
  0x12   :  { %1071 = vmatpush3.msra.mxu0 %v38_v15  ;;  %1102 = vmatpush3.msra.mxu1 %v145_v18  ;;  %v576_v1 = vld [vmem:[%s1940_s1 + $0x10] sm:$0xff]  ;;  %v255_v2 = vld [vmem:[%s1940_s1 + $0x1e8] ss:$0 sm:$0xff] }
  0x13   :  { %1072 = vmatprep.subr.mxu0 %v1335_v0  ;;  %1103 = vmatprep.subr.mxu1 %v1335_v0 }
  0x14   :  { %1073 = vmatpush3.msra.mxu0 %v37_v17  ;;  %1104 = vmatpush3.msra.mxu1 %v144_v20 }
  0x15   :  { %1074 = vmatprep.subr.mxu0 %v1335_v0  ;;  %1105 = vmatprep.subr.mxu1 %v1335_v0 }
  0x16   :  { %1075 = vmatpush3.msra.mxu0 %v36_v19  ;;  %1106 = vmatpush3.msra.mxu1 %v143_v34 }
  0x17   :  { %1076 = vmatprep.subr.mxu0 %v1335_v0  ;;  %1107 = vmatprep.subr.mxu1 %v1335_v0 }
  0x18   :  { %1077 = vmatpush3.msra.mxu0 %v35_v21  ;;  %1108 = vmatpush3.msra.mxu1 %v142_v36 }
  0x19   :  { %1079 = vmatmul.mubr.msk.f32.vlgmr.msra.gmra.mxu0 %vm48_vm1, %v1446_v22  ;;  %1120 = vmatprep.subr.mxu0 %v1335_v0 }
  0x1a   :  { %1081 = vmatprep.mubr.msk.f32.mxu0 %vm1336_vm0, %v1335_v0  ;;  %1121 = vmatpush3.msra.mxu0 %v254_v23 }
  0x1b   :  { %1122 = vmatprep.subr.mxu0 %v1335_v0  ;;  %1109 = vmatprep.subr.mxu1 %v1335_v0 }
  0x1c   :  { %1123 = vmatpush3.msra.mxu0 %v253_v24  ;;  %1110 = vmatpush3.msra.mxu1 %v141_v38 }
  0x1d   :  { %1082 = vmatmul.mubr.msk.f32.gmra.mxu0 %vm48_vm1, %v1465_v25  ;;  %1124 = vmatprep.subr.mxu0 %v1335_v0 }
  0x1e   :  { %1084 = vmatprep.mubr.msk.f32.mxu0 %vm1336_vm0, %v1335_v0  ;;  %1125 = vmatpush3.msra.mxu0 %v252_v26 }
  0x1f   :  { %1126 = vmatprep.subr.mxu0 %v1335_v0  ;;  %1153 = vmatprep.subr.mxu1 %v1335_v0 }
  0x20   :  { %1127 = vmatpush3.msra.mxu0 %v251_v27 }
  0x21   :  { %1085 = vmatmul.mubr.msk.f32.gmra.mxu0 %vm48_vm1, %v1482_v28  ;;  %1128 = vmatprep.subr.mxu0 %v1335_v0 }
  0x22   :  { %1129 = vmatpush3.msra.mxu0 %v250_v29  ;;  %1144 = vmatprep.mubr.msk.f32.mxu0 %vm1336_vm0, %v1335_v0 }
  0x23   :  { %1130 = vmatprep.subr.mxu0 %v1335_v0 }
  0x24   :  { %1131 = vmatpush3.msra.mxu0 %v249_v30 }
  0x25   :  { %1132 = vmatprep.subr.mxu0 %v1335_v0 }
  0x26   :  { %1133 = vmatpush3.msra.mxu0 %v248_v31 }
  0x27   :  { %1134 = vmatprep.subr.mxu0 %v1335_v0 }
  0x28   :  { %1135 = vmatpush3.msra.mxu0 %v247_v32 }
  0x29   :  { %1136 = vmatprep.subr.mxu0 %v1335_v0 }
  0x2a   :  { %1137 = vmatpush3.msra.mxu0 %v246_v33 }
  0x2b   :  { %1138 = vmatprep.subr.mxu0 %v1335_v0 }
  0x2c   :  { %1139 = vmatpush3.msra.mxu0 %v245_v35 }
  0x2d   :  { %1140 = vmatprep.subr.mxu0 %v1335_v0 }
  0x2e   :  { %1141 = vmatpush3.msra.mxu0 %v244_v37 }
  0x2f   :  { %1142 = vmatprep.subr.mxu0 %v1335_v0 }
  0x30   :  { %1143 = vmatpush3.msra.mxu0 %v243_v39 }
  0x31   :  { %1186 = vmatprep.subr.mxu0 %v1335_v0 }
  0xd9   :  { %v124_v41 = vpop.f32.mrf.mxu0 }
  0xda   :  { %v125_v42 = vadd.f32 %v124_v41, %v47_v40  ;;  %v1624_v41 = vld [vmem:[%s1941_s0 + $0xa8] sm:$0xff] }
  0xdb   :  { %v1080_v43 = vpop.f32.mrf.mxu0  ;;  %vm336_vm3 = vcmp.gt.f32.partialorder %v1624_v41, 0.5 }
  0xdc   :  { %v138_v44 = vmax.f32 %v125_v42, 0.0 }
  0xdd   :  { %v129_v45 = vpop.f32.mrf.mxu0 }
  0xde   :  { %v130_v46 = vadd.f32 %v129_v45, %v47_v40  ;;  %1112 = vmatmul.mubr.msk.f32.vlgmr.msra.gmra.mxu1 %vm48_vm1, %v138_v44  ;;  %1145 = vmatmul.mubr.msk.f32.vlgmr.msra.gmra.mxu0 %vm48_vm1, %v138_v44 }
  0xdf   :  { %v1083_v47 = vpop.f32.mrf.mxu0  ;;  %1114 = vmatprep.mubr.msk.f32.mxu1 %vm1336_vm0, %v1335_v0  ;;  %1147 = vmatprep.mubr.msk.f32.mxu0 %vm1336_vm0, %v1335_v0 }
  0xe0   :  { %v139_v48 = vmax.f32 %v130_v46, 0.0  ;;  %1154 = vmatpush3.msra.mxu1 %v587_v53 }
  0xe1   :  { %v134_v49 = vpop.f32.mrf.mxu0  ;;  %1155 = vmatprep.subr.mxu1 %v1335_v0 }
  0xe2   :  { %v135_v50 = vadd.f32 %v134_v49, %v47_v40  ;;  %1115 = vmatmul.mubr.msk.f32.gmra.mxu1 %vm48_vm1, %v139_v48  ;;  %1148 = vmatmul.mubr.msk.f32.gmra.mxu0 %vm48_vm1, %v139_v48 }
  0xe3   :  { %v1086_v51 = vpop.f32.mrf.mxu0  ;;  %1117 = vmatprep.mubr.msk.f32.mxu1 %vm1336_vm0, %v1335_v0  ;;  %1150 = vmatprep.mubr.msk.f32.mxu0 %vm1336_vm0, %v1335_v0 }
  0xe4   :  { %v140_v52 = vmax.f32 %v135_v50, 0.0  ;;  %1156 = vmatpush3.msra.mxu1 %v586_v54  ;;  %v153_v50 = vld [vmem:[%s1940_s1 + $0x1e0] ss:$0 sm:$0xff] }
  0xe5   :  { %1157 = vmatprep.subr.mxu1 %v1335_v0 }
  0xe6   :  { %1118 = vmatmul.mubr.msk.f32.gmra.mxu1 %vm48_vm1, %v140_v52  ;;  %1151 = vmatmul.mubr.msk.f32.gmra.mxu0 %vm48_vm1, %v140_v52  ;;  %v14_v52 = vld [vmem:[%s1941_s0 + $0x18] sm:$0xff] }
  0xe7   :  { %1177 = vmatprep.mubr.msk.f32.mxu1 %vm1336_vm0, %v1335_v0  ;;  %1210 = vmatprep.mubr.msk.f32.mxu0 %vm1336_vm0, %v1335_v0 }
  0xe8   :  { %1158 = vmatpush3.msra.mxu1 %v585_v55 }
  0xe9   :  { %1159 = vmatprep.subr.mxu1 %v1335_v0 }
  0xea   :  { %1160 = vmatpush3.msra.mxu1 %v584_v56  ;;  %v1639_v56 = vld [vmem:[%s1941_s0 + $0xb0] sm:$0xff] }
  0xeb   :  { %1161 = vmatprep.subr.mxu1 %v1335_v0  ;;  %vm337_vm6 = vcmp.gt.f32.partialorder %v1639_v56, 0.5 }
  0xec   :  { %1162 = vmatpush3.msra.mxu1 %v583_v57 }
  0xed   :  { %1163 = vmatprep.subr.mxu1 %v1335_v0 }
  0xee   :  { %1164 = vmatpush3.msra.mxu1 %v582_v58 }
  0xef   :  { %1165 = vmatprep.subr.mxu1 %v1335_v0 }
  0xf0   :  { %1166 = vmatpush3.msra.mxu1 %v581_v59 }
  0xf1   :  { %1167 = vmatprep.subr.mxu1 %v1335_v0 }
  0xf2   :  { %1168 = vmatpush3.msra.mxu1 %v580_v60 }
  0xf3   :  { %1169 = vmatprep.subr.mxu1 %v1335_v0 }
  0xf4   :  { %1170 = vmatpush3.msra.mxu1 %v579_v61 }
  0xf5   :  { %1171 = vmatprep.subr.mxu1 %v1335_v0 }
  0xf6   :  { %1172 = vmatpush3.msra.mxu1 %v578_v62 }
  0xf7   :  { %1173 = vmatprep.subr.mxu1 %v1335_v0 }
  0xf8   :  { %1174 = vmatpush3.msra.mxu1 %v577_v63 }
  0xf9   :  { %1175 = vmatprep.subr.mxu1 %v1335_v0 }
  0xfa   :  { %1176 = vmatpush3.msra.mxu1 %v576_v1 }
  0xfb   :  { %1219 = vmatprep.subr.mxu1 %v1335_v0 }
 0x19e   :  { %v1606_v3 = vpop.f32.mrf.mxu1  ;;  %v322_v4 = vpop.f32.mrf.mxu0 }
 0x19f   :  { %v1608_v5 = vadd.f32 %v322_v4, %v255_v2  ;;  %v230_v63 = vadd.f32 %v1606_v3, %v153_v50  ;;  %v1649_v4 = vld [vmem:[%s1941_s0 + $0xb8] sm:$0xff]  ;;  %v15_v3 = vld [vmem:[%s1941_s0 + $0x20] sm:$0xff] }
 0x1a0   :  { %v1113_v6 = vpop.f32.mrf.mxu1  ;;  %v1146_v7 = vpop.f32.mrf.mxu0  ;;  %vm338_vm9 = vcmp.gt.f32.partialorder %v1649_v4, 0.5 }
 0x1a1   :  { %v348_v8 = vand.u32 2147483647, %v1608_v5  ;;  %v339_v46 = vmax.f32 %v1608_v5, 0.0  ;;  %vm342_vm4 = vcmp.ne.f32.partialorder %v1608_v5, %v1608_v5 }
 0x1a2   :  { %v1611_v9 = vpop.f32.mrf.mxu1  ;;  %v327_v10 = vpop.f32.mrf.mxu0 }
 0x1a3   :  { %v351_v11 = vsub.f32 0.0, %v348_v8  ;;  %v1613_v12 = vadd.f32 %v327_v10, %v255_v2 }
 0x1a4   :  { %v1116_v13 = vpop.f32.mrf.mxu1  ;;  %v1149_v14 = vpop.f32.mrf.mxu0 }
 0x1a5   :  { %v354_v15 = vmul.f32 1.442695, %v351_v11  ;;  %v349_v16 = vand.u32 2147483647, %v1613_v12  ;;  %v340_v58 = vmax.f32 %v1613_v12, 0.0  ;;  %vm343_vm7 = vcmp.ne.f32.partialorder %v1613_v12, %v1613_v12 }
 0x1a6   :  { %v1616_v17 = vpop.f32.mrf.mxu1  ;;  %v332_v18 = vpop.f32.mrf.mxu0 }
 0x1a7   :  { %1260 = vpow2.f32 %v354_v15  ;;  %v352_v19 = vsub.f32 0.0, %v349_v16  ;;  %v1618_v20 = vadd.f32 %v332_v18, %v255_v2  ;;  %v235_v15 = vadd.f32 %v1611_v9, %v153_v50  ;;  %v16_v9 = vld [vmem:[%s1941_s0 + $0x28] sm:$0xff] }
 0x1a8   :  { %v1119_v21 = vpop.f32.mrf.mxu1  ;;  %v1152_v23 = vpop.f32.mrf.mxu0 }
 0x1a9   :  { %v356_v24 = vmul.f32 1.442695, %v352_v19  ;;  %v350_v26 = vand.u32 2147483647, %v1618_v20  ;;  %v341_v10 = vmax.f32 %v1618_v20, 0.0  ;;  %vm344_vm10 = vcmp.ne.f32.partialorder %v1618_v20, %v1618_v20 }
 0x1ab   :  { %1262 = vpow2.f32 %v356_v24  ;;  %v353_v27 = vsub.f32 0.0, %v350_v26 }
 0x1ad   :  { %v358_v29 = vmul.f32 1.442695, %v353_v27  ;;  %v240_v27 = vadd.f32 %v1616_v17, %v153_v50 }
 0x1af   :  { %1264 = vpow2.f32 %v358_v29 }
 0x1b4   :  { %v1261_v30 = vpop.eup %1260 }
 0x1b5   :  { %v360_v31 = vadd.f32 1.0, %v1261_v30  ;;  %v363_v35 = vmul.f32 -0.5, %v1261_v30  ;;  %v366_v39 = vand.u32 2147483647, %v1261_v30 }
 0x1b7   :  { %1266 = vlog2.f32 %v360_v31  ;;  %v364_v37 = vadd.f32 1.0, %v363_v35  ;;  %vm367_vm2 = vcmp.lt.f32.partialorder %v366_v39, 0.0004427343  ;;  %v19_v31 = vld [vmem:[%s1941_s0 + $0x40] sm:$0xff] }
 0x1b8   :  { %v1263_v32 = vpop.eup %1262 }
 0x1b9   :  { %v369_v33 = vadd.f32 1.0, %v1263_v32  ;;  %v372_v38 = vmul.f32 -0.5, %v1263_v32  ;;  %v365_v43 = vmul.f32 %v1261_v30, %v364_v37  ;;  %v375_v47 = vand.u32 2147483647, %v1263_v32 }
 0x1bb   :  { %1268 = vlog2.f32 %v369_v33  ;;  %v373_v44 = vadd.f32 1.0, %v372_v38  ;;  %vm376_vm5 = vcmp.lt.f32.partialorder %v375_v47, 0.0004427343 }
 0x1bc   :  { %v1265_v34 = vpop.eup %1264 }
 0x1bd   :  { %v378_v36 = vadd.f32 1.0, %v1265_v34  ;;  %v381_v45 = vmul.f32 -0.5, %v1265_v34  ;;  %v374_v54 = vmul.f32 %v1263_v32, %v373_v44  ;;  %v384_v59 = vand.u32 2147483647, %v1265_v34 }
 0x1bf   :  { %1270 = vlog2.f32 %v378_v36  ;;  %v382_v55 = vadd.f32 1.0, %v381_v45  ;;  %vm385_vm8 = vcmp.lt.f32.partialorder %v384_v59, 0.0004427343  ;;  %v1337_v59 = vmov 0  }
 0x1c0   :  { %1250 = vset.pattern.permute.xlu1 %v1337_v59  ;;  %1251 = vset.pattern.permute.xlu0 %v1337_v59 }
 0x1c1   :  { %v383_v7 = vmul.f32 %v1265_v34, %v382_v55 }
 0x1c4   :  { %v1267_v40 = vpop.eup %1266 }
 0x1c5   :  { %v362_v42 = vmul.f32 0.6931472, %v1267_v40 }
 0x1c7   :  { %v368_v48 = vsel %vm367_vm2, %v365_v43, %v362_v42 }
 0x1c8   :  { %v1269_v49 = vpop.eup %1268  ;;  %v387_v51 = vadd.f32 %v368_v48, %v339_v46 }
 0x1c9   :  { %v371_v53 = vmul.f32 0.6931472, %v1269_v49 }
 0x1ca   :  { %v390_v57 = vsel %vm342_vm4, %v1608_v5, %v387_v51 }
 0x1cb   :  { %v393_v60 = vsel %vm336_vm3, %v390_v57, %v1608_v5  ;;  %v377_v61 = vsel %vm376_vm5, %v374_v54, %v371_v53  ;;  %v17_v5 = vld [vmem:[%s1941_s0 + $0x30] sm:$0xff] }
 0x1cc   :  { %v1271_v62 = vpop.eup %1270  ;;  %v396_v1 = vmul.f32 %v393_v60, %v14_v52  ;;  %v388_v2 = vadd.f32 %v377_v61, %v340_v58 }
 0x1cd   :  { %v380_v6 = vmul.f32 0.6931472, %v1271_v62 }
 0x1ce   :  { %v1659_v8 = vadd.f32 %v396_v1, %v230_v63  ;;  %v391_v11 = vsel %vm343_vm7, %v1613_v12, %v388_v2 }
 0x1cf   :  { %v386_v13 = vsel %vm385_vm8, %v383_v7, %v380_v6  ;;  %v394_v14 = vsel %vm337_vm6, %v391_v11, %v1613_v12  ;;  %v18_v12 = vld [vmem:[%s1941_s0 + $0x38] sm:$0xff] }
 0x1d0   :  { %v389_v16 = vadd.f32 %v386_v13, %v341_v10  ;;  %1178 = vmatmul.mubr.msk.f32.vlgmr.msra.gmra.mxu1 %vm48_vm1, %v1659_v8  ;;  %v402_v18 = vmul.f32 %v1659_v8, %v17_v5  ;;  %v397_v19 = vmul.f32 %v394_v14, %v15_v3 }
 0x1d1   :  { %1180 = vmatprep.mubr.msk.f32.mxu1 %vm1336_vm0, %v1335_v0 }
 0x1d2   :  { %v405_v21 = vsel %vm48_vm1, %v402_v18, 0.0  ;;  %v1680_v23 = vadd.f32 %v397_v19, %v235_v15  ;;  %v392_v24 = vsel %vm344_vm10, %v1618_v20, %v389_v16 }
 0x1d3   :  { %406 = vadd.xlane.f32.xlu0 %v405_v21  ;;  %v395_v26 = vsel %vm338_vm9, %v392_v24, %v1618_v20 }
 0x1d4   :  { %1181 = vmatmul.mubr.msk.f32.gmra.mxu1 %vm48_vm1, %v1680_v23  ;;  %v403_v29 = vmul.f32 %v1680_v23, %v18_v12  ;;  %v398_v30 = vmul.f32 %v395_v26, %v16_v9 }
 0x1d5   :  { %1183 = vmatprep.mubr.msk.f32.mxu1 %vm1336_vm0, %v1335_v0 }
 0x1d6   :  { %v408_v32 = vsel %vm48_vm1, %v403_v29, 0.0  ;;  %v1694_v33 = vadd.f32 %v398_v30, %v240_v27  ;;  %v471_v27 = vsub.f32 1.0, %v1446_v22 }
 0x1d7   :  { %409 = vadd.xlane.f32.xlu0 %v408_v32  ;;  %v472_v32 = vsub.f32 1.0, %v1465_v25 }
 0x1d8   :  { %1184 = vmatmul.mubr.msk.f32.gmra.mxu1 %vm48_vm1, %v1694_v33  ;;  %v404_v17 = vmul.f32 %v1694_v33, %v19_v31 }
 0x1d9   :  { %1213 = vmatprep.mubr.msk.f32.mxu1 %vm1336_vm0, %v1335_v0 }
 0x1da   :  { %v411_v20 = vsel %vm48_vm1, %v404_v17, 0.0 }
 0x1db   :  { %412 = vadd.xlane.f32.xlu1 %v411_v20 }
 0x25c   :  { %v407_v34 = vpop.xlane.xlu0 %406 }
 0x25d   :  { %v414_v35 = vadd.f32 %v407_v34, %v1446_v22 }
 0x25f   :  { %v964_v36 = vmul.f32 -1.442695, %v414_v35 }
 0x260   :  { %v410_v37 = vpop.xlane.xlu0 %409 }
 0x261   :  { %1272 = vpow2.f32 %v964_v36  ;;  %v415_v38 = vadd.f32 %v410_v37, %v1465_v25 }
 0x263   :  { %v965_v39 = vmul.f32 -1.442695, %v415_v38  ;;  %v473_v38 = vsub.f32 1.0, %v1482_v28 }
 0x264   :  { %v413_v40 = vpop.xlane.xlu1 %412 }
 0x265   :  { %1274 = vpow2.f32 %v965_v39  ;;  %v416_v42 = vadd.f32 %v413_v40, %v1482_v28 }
 0x267   :  { %v966_v43 = vmul.f32 -1.442695, %v416_v42 }
 0x269   :  { %1276 = vpow2.f32 %v966_v43 }
 0x26e   :  { %v1273_v44 = vpop.eup %1272 }
 0x26f   :  { %v426_v45 = vadd.f32 1.0, %v1273_v44 }
 0x271   :  { %1278 = vrcp.f32 %v426_v45 }
 0x272   :  { %v1275_v46 = vpop.eup %1274 }
 0x273   :  { %v427_v47 = vadd.f32 1.0, %v1275_v46 }
 0x275   :  { %1280 = vrcp.f32 %v427_v47 }
 0x276   :  { %v1277_v48 = vpop.eup %1276 }
 0x277   :  { %v428_v49 = vadd.f32 1.0, %v1277_v48 }
 0x279   :  { %1282 = vrcp.f32 %v428_v49 }
 0x27e   :  { %v1705_v50 = vpop.eup %1278 }
 0x27f   :  { %1284 = vlog2.f32 %v1705_v50  ;;  %v444_v51 = vsub.f32 1.0, %v1705_v50 }
 0x281   :  { %1286 = vlog2.f32 %v444_v51 }
 0x282   :  { %v1709_v52 = vpop.eup %1280 }
 0x283   :  { %1288 = vlog2.f32 %v1709_v52  ;;  %v445_v53 = vsub.f32 1.0, %v1709_v52 }
 0x285   :  { %1290 = vlog2.f32 %v445_v53 }
 0x286   :  { %v1713_v54 = vpop.eup %1282 }
 0x287   :  { %v446_v55 = vsub.f32 1.0, %v1713_v54  ;;  %1292 = vlog2.f32 %v1713_v54 }
 0x289   :  { %1294 = vlog2.f32 %v446_v55 }
 0x28c   :  { %v1285_v57 = vpop.eup %1284 }
 0x28d   :  { %v436_v58 = vmul.f32 0.6931472, %v1285_v57 }
 0x28e   :  { %v1287_v60 = vpop.eup %1286 }
 0x28f   :  { %v441_v61 = vmax.f32 %v436_v58, -100.0  ;;  %v448_v62 = vmul.f32 0.6931472, %v1287_v60 }
 0x290   :  { %v1289_v63 = vpop.eup %1288  ;;  %v1719_v1 = vpop.f32.mrf.mxu1 }
 0x291   :  { %459 = vrot.lane.b32.xlu1 %v441_v61, %s1338_s23  ;;  %v438_v2 = vmul.f32 0.6931472, %v1289_v63  ;;  %v453_v3 = vmax.f32 %v448_v62, -100.0 }
 0x292   :  { %v1291_v6 = vpop.eup %1290  ;;  %v1179_v7 = vpop.f32.mrf.mxu1 }
 0x293   :  { %v442_v5 = vmax.f32 %v438_v2, -100.0  ;;  %v450_v10 = vmul.f32 0.6931472, %v1291_v6 }
 0x294   :  { %v1293_v11 = vpop.eup %1292  ;;  %v1721_v13 = vpop.f32.mrf.mxu1 }
 0x295   :  { %461 = vrot.lane.b32.xlu0 %v442_v5, %s1338_s23  ;;  %477 = vrot.lane.b32.xlu1 %v453_v3, %s1338_s23  ;;  %v454_v16 = vmax.f32 %v450_v10, -100.0  ;;  %v440_v19 = vmul.f32 0.6931472, %v1293_v11 }
 0x296   :  { %v1295_v14 = vpop.eup %1294  ;;  %v1182_v15 = vpop.f32.mrf.mxu1 }
 0x297   :  { %v452_v18 = vmul.f32 0.6931472, %v1295_v14  ;;  %v443_v24 = vmax.f32 %v440_v19, -100.0 }
 0x298   :  { %v1723_v12 = vpop.f32.mrf.mxu1 }
 0x299   :  { %479 = vrot.lane.b32.xlu1 %v454_v16, %s1338_s23  ;;  %v455_v9 = vmax.f32 %v452_v18, -100.0 }
 0x29a   :  { %v1185_v21 = vpop.f32.mrf.mxu1 }
 0x29b   :  { %481 = vrot.lane.b32.xlu0 %v455_v9, %s1338_s23  ;;  %v692_v21 = vld [vmem:[%s1940_s1 + $0x1d0] sm:$0xff] }
 0x29c   :  { %1187 = vmatpush3.msra.mxu0 %v692_v21  ;;  %1231 = vmatpush3.msra.mxu1 %v692_v21 }
 0x29d   :  { %463 = vrot.lane.b32.xlu1 %v443_v24, %s1338_s23  ;;  %1188 = vmatprep.subr.mxu0 %v1335_v0  ;;  %v691_v24 = vld [vmem:[%s1940_s1 + $0x1a8] sm:$0xff] }
 0x29e   :  { %1220 = vmatprep.subr.mxu1 %v1335_v0  ;;  %1189 = vmatpush3.msra.mxu0 %v691_v24 }
 0x29f   :  { %1232 = vmatpush3.msra.mxu1 %v691_v24  ;;  %1190 = vmatprep.subr.mxu0 %v1335_v0 }
 0x2a0   :  { %1221 = vmatprep.subr.mxu1 %v1335_v0 }
 0x303   :  { %v460_v26 = vpop.permute.xlu1 %459 }
 0x304   :  { %v468_v30 = vmul.f32 %v460_v26, %v1446_v22  ;;  %v690_v26 = vld [vmem:[%s1940_s1 + $0x180] sm:$0xff] }
 0x305   :  { %1191 = vmatpush3.msra.mxu0 %v690_v26  ;;  %1233 = vmatpush3.msra.mxu1 %v690_v26 }
 0x306   :  { %1192 = vmatprep.subr.mxu0 %v1335_v0  ;;  %1222 = vmatprep.subr.mxu1 %v1335_v0 }
 0x307   :  { %v478_v29 = vpop.permute.xlu1 %477  ;;  %v462_v17 = vpop.permute.xlu0 %461 }
 0x308   :  { %v486_v31 = vmul.f32 %v478_v29, %v471_v27  ;;  %v469_v35 = vmul.f32 %v462_v17, %v1465_v25  ;;  %v689_v29 = vld [vmem:[%s1940_s1 + $0x158] sm:$0xff]  ;;  %v686_v17 = vld [vmem:[%s1940_s1 + $0xe0] sm:$0xff] }
 0x309   :  { %1193 = vmatpush3.msra.mxu0 %v689_v29  ;;  %1234 = vmatpush3.msra.mxu1 %v689_v29 }
 0x30a   :  { %v489_v20 = vadd.f32 %v486_v31, %v468_v30  ;;  %1194 = vmatprep.subr.mxu0 %v1335_v0  ;;  %1223 = vmatprep.subr.mxu1 %v1335_v0  ;;  %v688_v30 = vld [vmem:[%s1940_s1 + $0x130] sm:$0xff]  ;;  %v687_v31 = vld [vmem:[%s1940_s1 + $0x108] sm:$0xff] }
 0x30b   :  { %v480_v34 = vpop.permute.xlu1 %479  ;;  %1195 = vmatpush3.msra.mxu0 %v688_v30  ;;  %1235 = vmatpush3.msra.mxu1 %v688_v30 }
 0x30c   :  { %v492_v36 = vsub.f32 0.0, %v489_v20  ;;  %v487_v37 = vmul.f32 %v480_v34, %v472_v32  ;;  %1196 = vmatprep.subr.mxu0 %v1335_v0  ;;  %1224 = vmatprep.subr.mxu1 %v1335_v0  ;;  %v685_v20 = vld [vmem:[%s1940_s1 + $0xb8] sm:$0xff]  ;;  %v684_v34 = vld [vmem:[%s1940_s1 + $0x90] sm:$0xff] }
 0x30d   :  { %v482_v39 = vpop.permute.xlu0 %481  ;;  %1197 = vmatpush3.msra.mxu0 %v687_v31  ;;  %1236 = vmatpush3.msra.mxu1 %v687_v31 }
 0x30e   :  { %v490_v40 = vadd.f32 %v487_v37, %v469_v35  ;;  %497 = vperm.xlu1 %1250, %v492_v36   ;;  %v488_v44 = vmul.f32 %v482_v39, %v473_v38  ;;  %1198 = vmatprep.subr.mxu0 %v1335_v0  ;;  %v683_v35 = vld [vmem:[%s1940_s1 + $0x68] sm:$0xff]  ;;  %v682_v36 = vld [vmem:[%s1940_s1 + $0x40] sm:$0xff]  ;;  %v681_v37 = vld [vmem:[%s1940_s1 + $0x18] sm:$0xff] }
 0x30f   :  { %v464_v42 = vpop.permute.xlu1 %463  ;;  %1225 = vmatprep.subr.mxu1 %v1335_v0  ;;  %1199 = vmatpush3.msra.mxu0 %v686_v17  ;;  %v27_v39 = vld [vmem:[%s1941_s0 + $0x80] sm:$0xff] }
 0x310   :  { %v493_v43 = vsub.f32 0.0, %v490_v40  ;;  %v470_v45 = vmul.f32 %v464_v42, %v1482_v28  ;;  %1237 = vmatpush3.msra.mxu1 %v686_v17  ;;  %1200 = vmatprep.subr.mxu0 %v1335_v0  ;;  %v24_v40 = vld [vmem:[%s1941_s0 + $0x68] sm:$0xff] }
 0x311   :  { %1226 = vmatprep.subr.mxu1 %v1335_v0  ;;  %1201 = vmatpush3.msra.mxu0 %v685_v20 }
 0x312   :  { %v491_v46 = vadd.f32 %v488_v44, %v470_v45  ;;  %502 = vperm.xlu0 %1251, %v493_v43   ;;  %1238 = vmatpush3.msra.mxu1 %v685_v20  ;;  %v23_v43 = vld [vmem:[%s1941_s0 + $0x60] sm:$0xff]  ;;  %v26_v44 = vld [vmem:[%s1941_s0 + $0x78] sm:$0xff]  ;;  %v571_v20 = vsub.f32 1.0, %v1639_v56 }
 0x313   :  { %1202 = vmatprep.subr.mxu0 %v1335_v0  ;;  %1227 = vmatprep.subr.mxu1 %v1335_v0 }
 0x314   :  { %v494_v47 = vsub.f32 0.0, %v491_v46  ;;  %1203 = vmatpush3.msra.mxu0 %v684_v34  ;;  %1239 = vmatpush3.msra.mxu1 %v684_v34  ;;  %v570_v34 = vsub.f32 1.0, %v1624_v41 }
 0x315   :  { %1204 = vmatprep.subr.mxu0 %v1335_v0  ;;  %1228 = vmatprep.subr.mxu1 %v1335_v0 }
 0x316   :  { %507 = vperm.xlu1 %1250, %v494_v47   ;;  %1205 = vmatpush3.msra.mxu0 %v683_v35 }
 0x317   :  { %1240 = vmatpush3.msra.mxu1 %v683_v35  ;;  %1206 = vmatprep.subr.mxu0 %v1335_v0  ;;  %v588_v35 = vld [vmem:[%s1940_s1 + $0x1f0] ss:$0 sm:$0xff] }
 0x318   :  { %1229 = vmatprep.subr.mxu1 %v1335_v0  ;;  %1207 = vmatpush3.msra.mxu0 %v682_v36 }
 0x319   :  { %1241 = vmatpush3.msra.mxu1 %v682_v36  ;;  %1208 = vmatprep.subr.mxu0 %v1335_v0 }
 0x31a   :  { %1230 = vmatprep.subr.mxu1 %v1335_v0  ;;  %1209 = vmatpush3.msra.mxu0 %v681_v37 }
 0x31b   :  { %1242 = vmatpush3.msra.mxu1 %v681_v37 }
 0x389   :  { %v1737_v48 = vpop.permute.xlu1 %497 }
 0x38a   :  { %v510_v51 = vmul.f32 %v1737_v48, %v1624_v41 }
 0x38c   :  { %v513_v58 = vsel %vm48_vm1, %v510_v51, 0.0 }
 0x38d   :  { %v1739_v49 = vpop.permute.xlu0 %502 }
 0x38e   :  { %v511_v53 = vmul.f32 %v1739_v49, %v1639_v56 }
 0x390   :  { %v514_v55 = vsel %vm48_vm1, %v511_v53, 0.0 }
 0x391   :  { %v1746_v57 = vpop.permute.xlu1 %507  ;;  %v515_v61 = vadd.f32 %v514_v55, %v513_v58 }
 0x392   :  { %v512_v60 = vmul.f32 %v1746_v57, %v1649_v4 }
 0x394   :  { %v516_v62 = vsel %vm48_vm1, %v512_v60, 0.0  ;;  %v28_v60 = vld [vmem:[%s1941_s0 + $0x88] sm:$0xff] }
 0x395   :  { %v517_v63 = vadd.f32 %v516_v62, %v515_v61  ;;  %v30_v61 = vld [vmem:[%s1941_s0 + $0x98] sm:$0xff]  ;;  %v29_v62 = vld [vmem:[%s1941_s0 + $0x90] sm:$0xff] }
 0x397   :  { %v518_v2 = vrot.slane %v517_v63, 4 }
 0x399   :  { %v519_v6 = vadd.f32 %v518_v2, %v517_v63  ;;  %v25_v63 = vld [vmem:[%s1941_s0 + $0x70] sm:$0xff] }
 0x39b   :  { %v520_v7 = vrot.slane %v519_v6, 2 }
 0x39d   :  { %v521_v5 = vadd.f32 %v520_v7, %v519_v6 }
 0x39f   :  { %v522_v3 = vrot.slane %v521_v5, 1 }
 0x3a1   :  { %v523_v10 = vadd.f32 %v522_v3, %v521_v5 }
 0x3a3   :  { %v1752_v11 = vmul.f32 0.125, %v523_v10 }
 0x3a5   :  { %v526_v14 = vmul.f32 %v1752_v11, %v1639_v56  ;;  %v525_v15 = vmul.f32 %v1752_v11, %v1624_v41  ;;  %v527_v19 = vmul.f32 %v1752_v11, %v1649_v4  ;;  %v544_v51 = vmul.f32 %v1752_v11, %v27_v39 }
 0x3a6   :  { %v543_v55 = vmul.f32 %v1752_v11, %v26_v44  ;;  %v670_v39 = vadd.f32 %v1721_v13, %v588_v35  ;;  %v675_v56 = vadd.f32 %v1723_v12, %v588_v35 }
 0x3a7   :  { %v531_v16 = vsel %vm48_vm1, %v526_v14, 0.0  ;;  %v528_v18 = vsel %vm48_vm1, %v525_v15, 0.0  ;;  %v534_v9 = vsel %vm48_vm1, %v527_v19, 0.0  ;;  %v545_v14 = vmul.f32 %v1752_v11, %v28_v60 }
 0x3a8   :  { %532 = vadd.xlane.f32.xlu1 %v531_v16  ;;  %529 = vadd.xlane.f32.xlu0 %v528_v18  ;;  %v31_v16 = vld [vmem:[%s1941_s0 + $0xa0] sm:$0xff] }
 0x3ac   :  { %535 = vadd.xlane.f32.xlu0 %v534_v9 }
 0x431   :  { %v533_v42 = vpop.xlane.xlu1 %532  ;;  %v530_v45 = vpop.xlane.xlu0 %529 }
 0x432   :  { %v538_v46 = vmul.f32 0.03125, %v533_v42  ;;  %v537_v47 = vmul.f32 0.03125, %v530_v45  ;;  %v572_v42 = vsub.f32 1.0, %v1649_v4  ;;  %v693_v4 = vld [vmem:[%s1940_s1 + $0x1f8] ss:$0 sm:$0xff] }
 0x434   :  { %v541_v53 = vmul.f32 %v538_v46, %v24_v40  ;;  %v540_v58 = vmul.f32 %v537_v47, %v23_v43  ;;  %v665_v43 = vadd.f32 %v1719_v1, %v588_v35 }
 0x435   :  { %v536_v2 = vpop.xlane.xlu0 %535 }
 0x436   :  { %v547_v6 = vadd.f32 %v544_v51, %v541_v53  ;;  %v546_v7 = vadd.f32 %v543_v55, %v540_v58  ;;  %v539_v5 = vmul.f32 0.03125, %v536_v2  ;;  %v21_v58 = vld [vmem:[%s1941_s0 + $0x50] sm:$0xff] }
 0x438   :  { %v550_v3 = vadd.f32 %v547_v6, %v30_v61  ;;  %v549_v10 = vadd.f32 %v546_v7, %v29_v62  ;;  %v542_v15 = vmul.f32 %v539_v5, %v25_v63 }
 0x43a   :  { %v968_v18 = vmul.f32 -1.442695, %v550_v3  ;;  %v967_v19 = vmul.f32 -1.442695, %v549_v10  ;;  %v548_v9 = vadd.f32 %v545_v14, %v542_v15  ;;  %v22_v3 = vld [vmem:[%s1941_s0 + $0x58] sm:$0xff] }
 0x43c   :  { %1296 = vpow2.f32 %v968_v18  ;;  %v551_v21 = vadd.f32 %v548_v9, %v31_v16  ;;  %v1339_v16 = vmov 1  }
 0x43d   :  { %1298 = vpow2.f32 %v967_v19  ;;  %1252 = vset.pattern.permute.xlu0 %v1339_v16  ;;  %1253 = vset.pattern.permute.xlu1 %v1339_v16 }
 0x43e   :  { %v969_v24 = vmul.f32 -1.442695, %v551_v21 }
 0x440   :  { %1300 = vpow2.f32 %v969_v24 }
 0x449   :  { %v1297_v26 = vpop.eup %1296 }
 0x44a   :  { %v1299_v29 = vpop.eup %1298  ;;  %v562_v30 = vadd.f32 1.0, %v1297_v26 }
 0x44b   :  { %v561_v31 = vadd.f32 1.0, %v1299_v29 }
 0x44c   :  { %1302 = vrcp.f32 %v562_v30 }
 0x44d   :  { %v1301_v17 = vpop.eup %1300  ;;  %1304 = vrcp.f32 %v561_v31 }
 0x44e   :  { %v563_v11 = vadd.f32 1.0, %v1301_v17 }
 0x450   :  { %1306 = vrcp.f32 %v563_v11 }
 0x459   :  { %v1303_v36 = vpop.eup %1302 }
 0x45a   :  { %v1305_v37 = vpop.eup %1304  ;;  %v574_v40 = vmul.f32 %v1303_v36, %v571_v20 }
 0x45b   :  { %v573_v44 = vmul.f32 %v1305_v37, %v570_v34 }
 0x45c   :  { %v679_v45 = vmul.f32 %v670_v39, %v574_v40 }
 0x45d   :  { %v1307_v46 = vpop.eup %1306  ;;  %v678_v47 = vmul.f32 %v665_v43, %v573_v44 }
 0x45e   :  { %1214 = vmatmul.mubr.msk.f32.vlgmr.msra.gmra.mxu1 %vm48_vm1, %v679_v45  ;;  %v575_v41 = vmul.f32 %v1307_v46, %v572_v42 }
 0x45f   :  { %1211 = vmatmul.mubr.msk.f32.vlgmr.msra.gmra.mxu0 %vm48_vm1, %v678_v47  ;;  %1216 = vmatprep.mubr.msk.f32.mxu1 %vm1336_vm0, %v1335_v0  ;;  %v20_v0 = vld [vmem:[%s1941_s0 + $0x48] sm:$0xff] }
 0x460   :  { %v680_v13 = vmul.f32 %v675_v56, %v575_v41 }
 0x462   :  { %1217 = vmatmul.mubr.msk.f32.gmra.mxu1 %vm48_vm1, %v680_v13 }
 0x51e   :  { %v774_v1 = vpop.f32.mrf.mxu1 }
 0x51f   :  { %v769_v51 = vpop.f32.mrf.mxu0  ;;  %v775_v53 = vadd.f32 %v774_v1, %v693_v4 }
 0x520   :  { %v770_v55 = vadd.f32 %v769_v51, %v693_v4  ;;  %v1215_v12 = vpop.f32.mrf.mxu1 }
 0x521   :  { %v784_v60 = vadd.f32 %v775_v53, %v1680_v23  ;;  %v1212_v61 = vpop.f32.mrf.mxu0 }
 0x522   :  { %v783_v62 = vadd.f32 %v770_v55, %v1659_v8  ;;  %v779_v63 = vpop.f32.mrf.mxu1 }
 0x523   :  { %v780_v2 = vadd.f32 %v779_v63, %v693_v4  ;;  %v787_v6 = vmul.f32 %v784_v60, %v21_v58 }
 0x524   :  { %v1218_v7 = vpop.f32.mrf.mxu1  ;;  %v786_v5 = vmul.f32 %v783_v62, %v20_v0 }
 0x525   :  { %v785_v10 = vadd.f32 %v780_v2, %v1694_v33  ;;  %v792_v23 = vsel %vm48_vm1, %v787_v6, 0.0  ;;  %v1332_v6 = vld [vmem:[%s1941_s0] sm:$0xff] }
 0x526   :  { %793 = vadd.xlane.f32.xlu1 %v792_v23  ;;  %v789_v14 = vsel %vm48_vm1, %v786_v5, 0.0 }
 0x527   :  { %790 = vadd.xlane.f32.xlu0 %v789_v14  ;;  %v788_v15 = vmul.f32 %v785_v10, %v22_v3 }
 0x529   :  { %v795_v8 = vsel %vm48_vm1, %v788_v15, 0.0 }
 0x52b   :  { %796 = vadd.xlane.f32.xlu0 %v795_v8  ;;  %v1334_v8 = vld [vmem:[%s1941_s0 + $0x8] sm:$0xff] }
 0x5af   :  { %v794_v18 = vpop.xlane.xlu1 %793 }
 0x5b0   :  { %v799_v19 = vadd.f32 %v794_v18, %v1465_v25  ;;  %v791_v9 = vpop.xlane.xlu0 %790 }
 0x5b1   :  { %v798_v21 = vadd.f32 %v791_v9, %v1446_v22  ;;  %v1341_v9 = vmov 2  }
 0x5b2   :  { %v977_v33 = vmul.f32 -1.442695, %v799_v19 }
 0x5b3   :  { %v976_v24 = vmul.f32 -1.442695, %v798_v21 }
 0x5b4   :  { %1308 = vpow2.f32 %v977_v33  ;;  %v797_v26 = vpop.xlane.xlu0 %796 }
 0x5b5   :  { %1310 = vpow2.f32 %v976_v24  ;;  %v800_v29 = vadd.f32 %v797_v26, %v1482_v28 }
 0x5b7   :  { %v978_v30 = vmul.f32 -1.442695, %v800_v29 }
 0x5b9   :  { %1312 = vpow2.f32 %v978_v30 }
 0x5c1   :  { %v1309_v31 = vpop.eup %1308 }
 0x5c2   :  { %v1311_v17 = vpop.eup %1310  ;;  %v811_v11 = vadd.f32 1.0, %v1309_v31 }
 0x5c3   :  { %v810_v20 = vadd.f32 1.0, %v1311_v17 }
 0x5c4   :  { %1314 = vrcp.f32 %v811_v11 }
 0x5c5   :  { %1316 = vrcp.f32 %v810_v20 }
 0x5c6   :  { %v1313_v34 = vpop.eup %1312 }
 0x5c7   :  { %v812_v35 = vadd.f32 1.0, %v1313_v34 }
 0x5c9   :  { %1318 = vrcp.f32 %v812_v35 }
 0x5d1   :  { %v1886_v36 = vpop.eup %1314 }
 0x5d2   :  { %v1888_v37 = vpop.eup %1316  ;;  %1320 = vlog2.f32 %v1886_v36  ;;  %v829_v43 = vsub.f32 1.0, %v1886_v36 }
 0x5d3   :  { %1322 = vlog2.f32 %v1888_v37  ;;  %v828_v39 = vsub.f32 1.0, %v1888_v37 }
 0x5d5   :  { %1324 = vlog2.f32 %v828_v39 }
 0x5d6   :  { %v1893_v40 = vpop.eup %1318 }
 0x5d7   :  { %v830_v42 = vsub.f32 1.0, %v1893_v40  ;;  %1326 = vlog2.f32 %v1893_v40 }
 0x5d9   :  { %1328 = vlog2.f32 %v830_v42 }
 0x5da   :  { %1330 = vlog2.f32 %v829_v43 }
 0x5df   :  { %v1321_v44 = vpop.eup %1320 }
 0x5e0   :  { %v1323_v45 = vpop.eup %1322  ;;  %v822_v46 = vmul.f32 0.6931472, %v1321_v44 }
 0x5e1   :  { %v820_v47 = vmul.f32 0.6931472, %v1323_v45 }
 0x5e2   :  { %v1325_v56 = vpop.eup %1324  ;;  %v826_v41 = vmax.f32 %v822_v46, -100.0 }
 0x5e3   :  { %v825_v13 = vmax.f32 %v820_v47, -100.0  ;;  %v832_v4 = vmul.f32 0.6931472, %v1325_v56 }
 0x5e4   :  { %v1327_v1 = vpop.eup %1326  ;;  %845 = vrot.lane.b32.xlu0 %v826_v41, %s1340_s19 }
 0x5e5   :  { %843 = vrot.lane.b32.xlu1 %v825_v13, %s1340_s19  ;;  %v837_v53 = vmax.f32 %v832_v4, -100.0  ;;  %v824_v12 = vmul.f32 0.6931472, %v1327_v1 }
 0x5e6   :  { %v1329_v51 = vpop.eup %1328 }
 0x5e7   :  { %v836_v55 = vmul.f32 0.6931472, %v1329_v51  ;;  %v1331_v58 = vpop.eup %1330  ;;  %v827_v61 = vmax.f32 %v824_v12, -100.0 }
 0x5e8   :  { %v834_v0 = vmul.f32 0.6931472, %v1331_v58 }
 0x5e9   :  { %858 = vrot.lane.b32.xlu1 %v837_v53, %s1340_s19  ;;  %v839_v60 = vmax.f32 %v836_v55, -100.0 }
 0x5ea   :  { %v838_v62 = vmax.f32 %v834_v0, -100.0 }
 0x5eb   :  { %862 = vrot.lane.b32.xlu0 %v839_v60, %s1340_s19 }
 0x5ed   :  { %847 = vrot.lane.b32.xlu1 %v827_v61, %s1340_s19 }
 0x5ef   :  { %907 = vperm.xlu0 %1252, %v1705_v50  }
 0x5f1   :  { %860 = vrot.lane.b32.xlu1 %v838_v62, %s1340_s19 }
 0x5f3   :  { %1255 = vset.pattern.permute.xlu0 %v1337_v59 }
 0x5f5   :  { %912 = vperm.xlu1 %1253, %v1709_v52   ;;  %v1333_v52 = vld [vmem:[%s1941_s0 + $0x10] sm:$0xff] }
 0x5f9   :  { %917 = vperm.xlu1 %1253, %v1713_v54  }
 0x5fd   :  { %1254 = vset.pattern.permute.xlu1 %v1337_v59 }
 0x656   :  { %v846_v5 = vpop.permute.xlu0 %845 }
 0x657   :  { %v844_v63 = vpop.permute.xlu1 %843  ;;  %v853_v16 = vmul.f32 %v1334_v8, %v846_v5 }
 0x658   :  { %v852_v7 = vmul.f32 %v1332_v6, %v844_v63 }
 0x65b   :  { %v859_v2 = vpop.permute.xlu1 %858 }
 0x65c   :  { %v867_v50 = vmul.f32 %v859_v2, %v471_v27 }
 0x65d   :  { %v863_v14 = vpop.permute.xlu0 %862 }
 0x65e   :  { %v870_v3 = vadd.f32 %v867_v50, %v852_v7  ;;  %v869_v22 = vmul.f32 %v863_v14, %v473_v38 }
 0x65f   :  { %v848_v10 = vpop.permute.xlu1 %847 }
 0x660   :  { %v873_v23 = vsub.f32 0.0, %v870_v3  ;;  %v854_v54 = vmul.f32 %v1333_v52, %v848_v10 }
 0x662   :  { %885 = vperm.xlu1 %1254, %v873_v23   ;;  %v872_v18 = vadd.f32 %v869_v22, %v854_v54 }
 0x663   :  { %v861_v15 = vpop.permute.xlu1 %860 }
 0x664   :  { %v868_v27 = vmul.f32 %v861_v15, %v472_v32  ;;  %v875_v33 = vsub.f32 0.0, %v872_v18  ;;  %v876_v32 = vlaneseq }
 0x666   :  { %v871_v19 = vadd.f32 %v868_v27, %v853_v16  ;;  %1257 = vset.pattern.permute.xlu1 %v1341_v9  ;;  %v877_v24 = vand.u32 127, %v876_v32 }
 0x667   :  { %934 = vperm.xlu1 %1257, %v1886_v36  }
 0x668   :  { %v874_v21 = vsub.f32 0.0, %v871_v19  ;;  %vm882_vm11 = vcmp.eq.s32.totalorder %v877_v24, 1  ;;  %vm878_vm12 = vcmp.eq.s32.totalorder %v877_v24, 0  ;;  %vm904_vm13 = vcmp.eq.s32.totalorder %v877_v24, 2 }
 0x669   :  { %v880_v17 = vsel %vm878_vm12, %v1739_v49, 0.0  ;;  %vm926_vm14 = vcmp.eq.s32.totalorder %v877_v24, 3  ;;  %v881_v36 = vsel %vm878_vm12, %v1746_v57, 0.0 }
 0x66a   :  { %890 = vperm.xlu0 %1255, %v874_v21   ;;  %v908_v26 = vpop.permute.xlu0 %907 }
 0x66b   :  { %1258 = vset.pattern.permute.xlu1 %v1337_v59  ;;  %v879_v59 = vsel %vm878_vm12, %v1737_v48, 0.0 }
 0x66c   :  { %895 = vperm.xlu1 %1258, %v875_v33  }
 0x66e   :  { %1256 = vset.pattern.permute.xlu0 %v1341_v9 }
 0x66f   :  { %929 = vperm.xlu0 %1256, %v1888_v37  }
 0x670   :  { %1259 = vset.pattern.permute.xlu1 %v1341_v9  ;;  %v913_v25 = vpop.permute.xlu1 %912 }
 0x671   :  { %939 = vperm.xlu1 %1259, %v1893_v40   ;;  %v921_v37 = vsel %vm904_vm13, %v913_v25, 0.0  ;;  %v920_v40 = vsel %vm904_vm13, %v908_v26, 0.0 }
 0x674   :  { %v918_v28 = vpop.permute.xlu1 %917 }
 0x675   :  { %v922_v44 = vsel %vm904_vm13, %v918_v28, 0.0 }
 0x6dd   :  { %v886_v38 = vpop.permute.xlu1 %885 }
 0x6de   :  { %v898_v30 = vsel %vm882_vm11, %v886_v38, 0.0 }
 0x6df   :  { %v901_v11 = vadd.f32 %v898_v30, %v879_v59 }
 0x6e1   :  { %v923_v45 = vadd.f32 %v920_v40, %v901_v11 }
 0x6e2   :  { %v935_v29 = vpop.permute.xlu1 %934 }
 0x6e3   :  { %v943_v48 = vsel %vm926_vm14, %v935_v29, 0.0 }
 0x6e5   :  { %v891_v31 = vpop.permute.xlu0 %890 }
 0x6e6   :  { %v899_v20 = vsel %vm882_vm11, %v891_v31, 0.0 }
 0x6e7   :  { %v902_v34 = vadd.f32 %v899_v20, %v880_v17  ;;  %v896_v35 = vpop.permute.xlu1 %895 }
 0x6e8   :  { %v900_v39 = vsel %vm882_vm11, %v896_v35, 0.0 }
 0x6e9   :  { %v924_v42 = vadd.f32 %v921_v37, %v902_v34  ;;  %v903_v43 = vadd.f32 %v900_v39, %v881_v36 }
 0x6ea   :  { %v930_v49 = vpop.permute.xlu0 %929 }
 0x6eb   :  { %v946_v46 = vadd.f32 %v943_v48, %v924_v42  ;;  %v942_v47 = vsel %vm926_vm14, %v930_v49, 0.0  ;;  %v925_v56 = vadd.f32 %v922_v44, %v903_v43 }
 0x6ec   :  { %v945_v41 = vadd.f32 %v942_v47, %v923_v45  ;;  %v940_v13 = vpop.permute.xlu1 %939 }
 0x6ed   :  { %949 = vst [vmem:[%s1942_s2 + $0x8] sm:$0xff] %v946_v46  ;;  %v944_v57 = vsel %vm926_vm14, %v940_v13, 0.0 }
 0x6ee   :  { %948 = vst [vmem:[%s1942_s2] sm:$0xff] %v945_v41  ;;  %v947_v4 = vadd.f32 %v944_v57, %v925_v56 }
 0x6f0   :  { %950 = vst [vmem:[%s1942_s2 + $0x10] sm:$0xff] %v947_v4 }

</bundles_post_ra>
